<compile_context>
chip_gen: v5e
topology: v5e:2x2
jax: 0.10.0
libtpu: 0.0.40
codegen_flags: <defaults>
</compile_context>

<pallas_src>
import functools

import jax
import jax.numpy as jnp
from jax.experimental import pallas as pl
from jax.experimental.pallas import tpu as pltpu

DTYPE = jnp.float32


# =============================================================================
# Pallas kernel: channel pool + packed 7x7 conv (VPU weighted sum) + sigmoid
# =============================================================================
def _spatial_attention_kernel(w_ref, x_ref, o_ref, pool_ref, *, H, W, K):
    """One batch element.

    w_ref:    (K*K, Lw) f32 in VMEM. Row t = ky*K + kx holds the two-segment
              tap weight vector: lanes [0,W) = conv_w[0,0,ky,kx] (avg plane),
              lanes [Wp, Wp+W) = conv_w[0,1,ky,kx] (max plane), 0 elsewhere.
    x_ref:    (C, H, W) f32 in VMEM -- UNPADDED input block for this batch.
    o_ref:    (H, W) f32 in VMEM.
    pool_ref: (Hp, 2*Wp) f32 VMEM scratch: zero-padded avg plane in columns
              [0, Wp), zero-padded max plane in columns [Wp, 2*Wp).
    """
    P = (K - 1) // 2
    Hp = H + 2 * P
    Wp = W + 2 * P
    Lw = Wp + W  # width of one packed window load (avg window | gap | max window)

    # ---- channel pooling, fused in-kernel (no padded HBM copy of x) --------
    # Cast kept on purpose: if production inputs become bf16, pooling and the
    # weighted sum must stay f32 (v5e VPU/EUP have no bf16).
    x = x_ref[...].astype(jnp.float32)           # (C, H, W)
    avg = jnp.mean(x, axis=0)                    # (H, W)
    mx = jnp.max(x, axis=0)                      # (H, W)

    # ---- pad only the pooled planes, inside VMEM ---------------------------
    pool_ref[...] = jnp.zeros_like(pool_ref)                     # zero halo
    pool_ref[pl.ds(P, H), pl.ds(P, W)] = avg                     # avg interior
    pool_ref[pl.ds(P, H), pl.ds(Wp + P, W)] = mx                 # max interior

    # ---- 49-tap weighted sum on the VPU (N=1 conv: MXU would be ~1% used) --
    # 4 independent accumulators break the serial add chain; each tap is one
    # ref window load + one vmul + one vadd over a (H, Lw) tile.
    accs = [jnp.zeros((H, Lw), jnp.float32) for _ in range(4)]
    t = 0
    for ky in range(K):                      # static python loop -> unrolled,
        for kx in range(K):                  # all offsets are compile-time.
            win = pool_ref[pl.ds(ky, H), pl.ds(kx, Lw)]          # (H, Lw) vld
            wrow = w_ref[pl.ds(t, 1), :]                         # (1, Lw) vld
            accs[t % 4] = accs[t % 4] + win * wrow
            t += 1
    acc = (accs[0] + accs[1]) + (accs[2] + accs[3])              # (H, Lw)

    # Fold the avg-lane segment and the max-lane segment together.
    conv = acc[:, :W] + acc[:, Wp:Wp + W]                        # (H, W)

    # sigmoid: exp on EUP, exact reciprocal (1e-5 tolerance vs reference).
    sig = pl.reciprocal(1.0 + jnp.exp(-conv), approx=False)
    o_ref[...] = sig.astype(o_ref.dtype)


# =============================================================================
# Wrapper (PyTorch layout in / out)
# =============================================================================
def _pack_tap_weights(conv_w, W, Wp, dtype):
    """(1,2,K,K) PyTorch conv weight -> (K*K, Wp+W) two-segment tap vectors."""
    K = conv_w.shape[-1]
    Lw = Wp + W
    w_avg = conv_w[0, 0].reshape(K * K, 1).astype(dtype)   # tap order [ky, kx]
    w_max = conv_w[0, 1].reshape(K * K, 1).astype(dtype)
    lane = jnp.arange(Lw)
    avg_seg = (lane < W).astype(dtype)[None, :]             # lanes [0, W)
    max_seg = (lane >= Wp).astype(dtype)[None, :]           # lanes [Wp, Wp+W)
    return w_avg * avg_seg + w_max * max_seg                # (K*K, Lw)


def spatial_attention(x_nchw, conv_w):
    """x: (B, C, H, W); conv_w: (1, 2, K, K) PyTorch layout. Returns (B,1,H,W)."""
    B, C, H, W = x_nchw.shape
    K = conv_w.shape[-1]
    P = (K - 1) // 2
    Hp, Wp = H + 2 * P, W + 2 * P
    Lw = Wp + W

    x = x_nchw.astype(DTYPE)                       # NO spatial padding of x
    wvec = _pack_tap_weights(conv_w, W, Wp, DTYPE)  # tiny (K*K, Lw) table

    out = pl.pallas_call(
        functools.partial(_spatial_attention_kernel, H=H, W=W, K=K),
        out_shape=jax.ShapeDtypeStruct((B, H, W), DTYPE),
        grid=(B,),
        in_specs=[
            # Packed tap weights: constant block index -> fetched once,
            # resident in VMEM across grid steps.
            pl.BlockSpec((K * K, Lw), lambda b: (0, 0)),
            # Unpadded per-batch input block.
            pl.BlockSpec((None, C, H, W), lambda b: (b, 0, 0, 0)),
        ],
        out_specs=pl.BlockSpec((None, H, W), lambda b: (b, 0, 0)),
        scratch_shapes=[pltpu.VMEM((Hp, 2 * Wp), jnp.float32)],  # packed pooled planes
        compiler_params=pltpu.CompilerParams(
            dimension_semantics=("parallel",)),   # B>=2 keeps both v7x TCs busy
    )(wvec, x)
    return out.reshape(B, 1, H, W)


# Pure-JAX reference (matches the PyTorch module's eval forward).
def spatial_attention_ref(x, conv_w):
    avg = jnp.mean(x, axis=1, keepdims=True)
    mx = jnp.max(x, axis=1, keepdims=True)
    cat = jnp.concatenate([avg, mx], axis=1)
    P = (conv_w.shape[-1] - 1) // 2
    y = jax.lax.conv_general_dilated(
        cat, conv_w, window_strides=(1, 1), padding=((P, P), (P, P)),
        dimension_numbers=("NCHW", "OIHW", "NCHW"))
    return jax.nn.sigmoid(y)


if __name__ == "__main__":
    key = jax.random.PRNGKey(0)
    kx_key, kw_key = jax.random.split(key)
    B, C, H, W, K = 2, 4, 16, 16, 7

    x = jax.random.normal(kx_key, (B, C, H, W), DTYPE)             # NCHW, like PyTorch
    conv_w = jax.random.normal(kw_key, (1, 2, K, K), DTYPE) / jnp.sqrt(2.0 * K * K)

    fwd = jax.jit(spatial_attention)
    out = fwd(x, conv_w)
    jax.block_until_ready(out)

    ref = spatial_attention_ref(x, conv_w)
    assert out.shape == (B, 1, H, W)
    assert bool(jnp.all(jnp.isfinite(out)))
    assert bool(jnp.allclose(out, ref, atol=1e-5, rtol=1e-5))
    print("KERNEL_OK")
</pallas_src>

<mosaic_0001>
module attributes {stable_mosaic.version = 11 : i64} {
  func.func @_spatial_attention_kernel(%arg0: i32, %arg1: memref<49x38xf32, #tpu.memory_space<vmem>>, %arg2: memref<1x4x16x16xf32, #tpu.memory_space<vmem>>, %arg3: memref<1x16x16xf32, #tpu.memory_space<vmem>>, %arg4: memref<22x44xf32, #tpu.memory_space<vmem>>) attributes {dimension_semantics = [#tpu.dimension_semantics<parallel>], iteration_bounds = array<i64: 2>, scalar_prefetch = 0 : i64, scratch_operands = 1 : i64, tpu.core_type = #tpu.core_type<tc>, window_params = [{pipeline_mode = #tpu.pipeline_mode<synchronous>, transform_indices = @transform_0, window_bounds = array<i64: 49, 38>}, {transform_indices = @transform_1, window_bounds = array<i64: 1, 4, 16, 16>}, {transform_indices = @transform_2, window_bounds = array<i64: 1, 16, 16>}]} {
    %c0 = arith.constant 0 : index
    %c0_0 = arith.constant 0 : index
    %c0_1 = arith.constant 0 : index
    %c0_2 = arith.constant 0 : index
    %0 = vector.load %arg2[%c0, %c0_0, %c0_1, %c0_2] : memref<1x4x16x16xf32, #tpu.memory_space<vmem>>, vector<1x4x16x16xf32>
    %1 = vector.shape_cast %0 : vector<1x4x16x16xf32> to vector<4x16x16xf32>
    %cst = arith.constant dense<0.000000e+00> : vector<16x16xf32>
    %2 = vector.multi_reduction <add>, %1, %cst [0] : vector<4x16x16xf32> to vector<16x16xf32>
    %cst_3 = arith.constant 4.000000e+00 : f32
    %3 = vector.broadcast %cst_3 : f32 to vector<16x16xf32>
    %4 = arith.divf %2, %3 : vector<16x16xf32>
    %cst_4 = arith.constant dense<0xFF800000> : vector<16x16xf32>
    %5 = vector.multi_reduction <maximumf>, %1, %cst_4 [0] : vector<4x16x16xf32> to vector<16x16xf32>
    %cst_5 = arith.constant 0.000000e+00 : f32
    %6 = vector.broadcast %cst_5 : f32 to vector<22x44xf32>
    %c0_6 = arith.constant 0 : index
    %c0_7 = arith.constant 0 : index
    %7 = vector.load %arg4[%c0_6, %c0_7] : memref<22x44xf32, #tpu.memory_space<vmem>>, vector<22x44xf32>
    tpu.vector_store %arg4[%c0_6, %c0_7], %6 {strides = array<i32>} : memref<22x44xf32, #tpu.memory_space<vmem>>, vector<22x44xf32>,
    %c3 = arith.constant 3 : index
    %c3_8 = arith.constant 3 : index
    %8 = vector.load %arg4[%c3, %c3_8] : memref<22x44xf32, #tpu.memory_space<vmem>>, vector<16x16xf32>
    tpu.vector_store %arg4[%c3, %c3_8], %4 {strides = array<i32>} : memref<22x44xf32, #tpu.memory_space<vmem>>, vector<16x16xf32>,
    %c3_9 = arith.constant 3 : index
    %c25 = arith.constant 25 : index
    %9 = vector.load %arg4[%c3_9, %c25] : memref<22x44xf32, #tpu.memory_space<vmem>>, vector<16x16xf32>
    tpu.vector_store %arg4[%c3_9, %c25], %5 {strides = array<i32>} : memref<22x44xf32, #tpu.memory_space<vmem>>, vector<16x16xf32>,
    %cst_10 = arith.constant 0.000000e+00 : f32
    %10 = vector.broadcast %cst_10 : f32 to vector<16x38xf32>
    %cst_11 = arith.constant 0.000000e+00 : f32
    %11 = vector.broadcast %cst_11 : f32 to vector<16x38xf32>
    %cst_12 = arith.constant 0.000000e+00 : f32
    %12 = vector.broadcast %cst_12 : f32 to vector<16x38xf32>
    %cst_13 = arith.constant 0.000000e+00 : f32
    %13 = vector.broadcast %cst_13 : f32 to vector<16x38xf32>
    %c0_14 = arith.constant 0 : index
    %c0_15 = arith.constant 0 : index
    %14 = vector.load %arg4[%c0_14, %c0_15] : memref<22x44xf32, #tpu.memory_space<vmem>>, vector<16x38xf32>
    %c0_16 = arith.constant 0 : index
    %c0_17 = arith.constant 0 : index
    %15 = vector.load %arg1[%c0_16, %c0_17] : memref<49x38xf32, #tpu.memory_space<vmem>>, vector<1x38xf32>
    %16 = vector.broadcast %15 : vector<1x38xf32> to vector<16x38xf32>
    %17 = arith.mulf %14, %16 : vector<16x38xf32>
    %18 = arith.addf %10, %17 : vector<16x38xf32>
    %c0_18 = arith.constant 0 : index
    %c1 = arith.constant 1 : index
    %19 = vector.load %arg4[%c0_18, %c1] : memref<22x44xf32, #tpu.memory_space<vmem>>, vector<16x38xf32>
    %c1_19 = arith.constant 1 : index
    %c0_20 = arith.constant 0 : index
    %20 = vector.load %arg1[%c1_19, %c0_20] : memref<49x38xf32, #tpu.memory_space<vmem>>, vector<1x38xf32>
    %21 = vector.broadcast %20 : vector<1x38xf32> to vector<16x38xf32>
    %22 = arith.mulf %19, %21 : vector<16x38xf32>
    %23 = arith.addf %11, %22 : vector<16x38xf32>
    %c0_21 = arith.constant 0 : index
    %c2 = arith.constant 2 : index
    %24 = vector.load %arg4[%c0_21, %c2] : memref<22x44xf32, #tpu.memory_space<vmem>>, vector<16x38xf32>
    %c2_22 = arith.constant 2 : index
    %c0_23 = arith.constant 0 : index
    %25 = vector.load %arg1[%c2_22, %c0_23] : memref<49x38xf32, #tpu.memory_space<vmem>>, vector<1x38xf32>
    %26 = vector.broadcast %25 : vector<1x38xf32> to vector<16x38xf32>
    %27 = arith.mulf %24, %26 : vector<16x38xf32>
    %28 = arith.addf %12, %27 : vector<16x38xf32>
    %c0_24 = arith.constant 0 : index
    %c3_25 = arith.constant 3 : index
    %29 = vector.load %arg4[%c0_24, %c3_25] : memref<22x44xf32, #tpu.memory_space<vmem>>, vector<16x38xf32>
    %c3_26 = arith.constant 3 : index
    %c0_27 = arith.constant 0 : index
    %30 = vector.load %arg1[%c3_26, %c0_27] : memref<49x38xf32, #tpu.memory_space<vmem>>, vector<1x38xf32>
    %31 = vector.broadcast %30 : vector<1x38xf32> to vector<16x38xf32>
    %32 = arith.mulf %29, %31 : vector<16x38xf32>
    %33 = arith.addf %13, %32 : vector<16x38xf32>
    %c0_28 = arith.constant 0 : index
    %c4 = arith.constant 4 : index
    %34 = vector.load %arg4[%c0_28, %c4] : memref<22x44xf32, #tpu.memory_space<vmem>>, vector<16x38xf32>
    %c4_29 = arith.constant 4 : index
    %c0_30 = arith.constant 0 : index
    %35 = vector.load %arg1[%c4_29, %c0_30] : memref<49x38xf32, #tpu.memory_space<vmem>>, vector<1x38xf32>
    %36 = vector.broadcast %35 : vector<1x38xf32> to vector<16x38xf32>
    %37 = arith.mulf %34, %36 : vector<16x38xf32>
    %38 = arith.addf %18, %37 : vector<16x38xf32>
    %c0_31 = arith.constant 0 : index
    %c5 = arith.constant 5 : index
    %39 = vector.load %arg4[%c0_31, %c5] : memref<22x44xf32, #tpu.memory_space<vmem>>, vector<16x38xf32>
    %c5_32 = arith.constant 5 : index
    %c0_33 = arith.constant 0 : index
    %40 = vector.load %arg1[%c5_32, %c0_33] : memref<49x38xf32, #tpu.memory_space<vmem>>, vector<1x38xf32>
    %41 = vector.broadcast %40 : vector<1x38xf32> to vector<16x38xf32>
    %42 = arith.mulf %39, %41 : vector<16x38xf32>
    %43 = arith.addf %23, %42 : vector<16x38xf32>
    %c0_34 = arith.constant 0 : index
    %c6 = arith.constant 6 : index
    %44 = vector.load %arg4[%c0_34, %c6] : memref<22x44xf32, #tpu.memory_space<vmem>>, vector<16x38xf32>
    %c6_35 = arith.constant 6 : index
    %c0_36 = arith.constant 0 : index
    %45 = vector.load %arg1[%c6_35, %c0_36] : memref<49x38xf32, #tpu.memory_space<vmem>>, vector<1x38xf32>
    %46 = vector.broadcast %45 : vector<1x38xf32> to vector<16x38xf32>
    %47 = arith.mulf %44, %46 : vector<16x38xf32>
    %48 = arith.addf %28, %47 : vector<16x38xf32>
    %c1_37 = arith.constant 1 : index
    %c0_38 = arith.constant 0 : index
    %49 = vector.load %arg4[%c1_37, %c0_38] : memref<22x44xf32, #tpu.memory_space<vmem>>, vector<16x38xf32>
    %c7 = arith.constant 7 : index
    %c0_39 = arith.constant 0 : index
    %50 = vector.load %arg1[%c7, %c0_39] : memref<49x38xf32, #tpu.memory_space<vmem>>, vector<1x38xf32>
    %51 = vector.broadcast %50 : vector<1x38xf32> to vector<16x38xf32>
    %52 = arith.mulf %49, %51 : vector<16x38xf32>
    %53 = arith.addf %33, %52 : vector<16x38xf32>
    %c1_40 = arith.constant 1 : index
    %c1_41 = arith.constant 1 : index
    %54 = vector.load %arg4[%c1_40, %c1_41] : memref<22x44xf32, #tpu.memory_space<vmem>>, vector<16x38xf32>
    %c8 = arith.constant 8 : index
    %c0_42 = arith.constant 0 : index
    %55 = vector.load %arg1[%c8, %c0_42] : memref<49x38xf32, #tpu.memory_space<vmem>>, vector<1x38xf32>
    %56 = vector.broadcast %55 : vector<1x38xf32> to vector<16x38xf32>
    %57 = arith.mulf %54, %56 : vector<16x38xf32>
    %58 = arith.addf %38, %57 : vector<16x38xf32>
    %c1_43 = arith.constant 1 : index
    %c2_44 = arith.constant 2 : index
    %59 = vector.load %arg4[%c1_43, %c2_44] : memref<22x44xf32, #tpu.memory_space<vmem>>, vector<16x38xf32>
    %c9 = arith.constant 9 : index
    %c0_45 = arith.constant 0 : index
    %60 = vector.load %arg1[%c9, %c0_45] : memref<49x38xf32, #tpu.memory_space<vmem>>, vector<1x38xf32>
    %61 = vector.broadcast %60 : vector<1x38xf32> to vector<16x38xf32>
    %62 = arith.mulf %59, %61 : vector<16x38xf32>
    %63 = arith.addf %43, %62 : vector<16x38xf32>
    %c1_46 = arith.constant 1 : index
    %c3_47 = arith.constant 3 : index
    %64 = vector.load %arg4[%c1_46, %c3_47] : memref<22x44xf32, #tpu.memory_space<vmem>>, vector<16x38xf32>
    %c10 = arith.constant 10 : index
    %c0_48 = arith.constant 0 : index
    %65 = vector.load %arg1[%c10, %c0_48] : memref<49x38xf32, #tpu.memory_space<vmem>>, vector<1x38xf32>
    %66 = vector.broadcast %65 : vector<1x38xf32> to vector<16x38xf32>
    %67 = arith.mulf %64, %66 : vector<16x38xf32>
    %68 = arith.addf %48, %67 : vector<16x38xf32>
    %c1_49 = arith.constant 1 : index
    %c4_50 = arith.constant 4 : index
    %69 = vector.load %arg4[%c1_49, %c4_50] : memref<22x44xf32, #tpu.memory_space<vmem>>, vector<16x38xf32>
    %c11 = arith.constant 11 : index
    %c0_51 = arith.constant 0 : index
    %70 = vector.load %arg1[%c11, %c0_51] : memref<49x38xf32, #tpu.memory_space<vmem>>, vector<1x38xf32>
    %71 = vector.broadcast %70 : vector<1x38xf32> to vector<16x38xf32>
    %72 = arith.mulf %69, %71 : vector<16x38xf32>
    %73 = arith.addf %53, %72 : vector<16x38xf32>
    %c1_52 = arith.constant 1 : index
    %c5_53 = arith.constant 5 : index
    %74 = vector.load %arg4[%c1_52, %c5_53] : memref<22x44xf32, #tpu.memory_space<vmem>>, vector<16x38xf32>
    %c12 = arith.constant 12 : index
    %c0_54 = arith.constant 0 : index
    %75 = vector.load %arg1[%c12, %c0_54] : memref<49x38xf32, #tpu.memory_space<vmem>>, vector<1x38xf32>
    %76 = vector.broadcast %75 : vector<1x38xf32> to vector<16x38xf32>
    %77 = arith.mulf %74, %76 : vector<16x38xf32>
    %78 = arith.addf %58, %77 : vector<16x38xf32>
    %c1_55 = arith.constant 1 : index
    %c6_56 = arith.constant 6 : index
    %79 = vector.load %arg4[%c1_55, %c6_56] : memref<22x44xf32, #tpu.memory_space<vmem>>, vector<16x38xf32>
    %c13 = arith.constant 13 : index
    %c0_57 = arith.constant 0 : index
    %80 = vector.load %arg1[%c13, %c0_57] : memref<49x38xf32, #tpu.memory_space<vmem>>, vector<1x38xf32>
    %81 = vector.broadcast %80 : vector<1x38xf32> to vector<16x38xf32>
    %82 = arith.mulf %79, %81 : vector<16x38xf32>
    %83 = arith.addf %63, %82 : vector<16x38xf32>
    %c2_58 = arith.constant 2 : index
    %c0_59 = arith.constant 0 : index
    %84 = vector.load %arg4[%c2_58, %c0_59] : memref<22x44xf32, #tpu.memory_space<vmem>>, vector<16x38xf32>
    %c14 = arith.constant 14 : index
    %c0_60 = arith.constant 0 : index
    %85 = vector.load %arg1[%c14, %c0_60] : memref<49x38xf32, #tpu.memory_space<vmem>>, vector<1x38xf32>
    %86 = vector.broadcast %85 : vector<1x38xf32> to vector<16x38xf32>
    %87 = arith.mulf %84, %86 : vector<16x38xf32>
    %88 = arith.addf %68, %87 : vector<16x38xf32>
    %c2_61 = arith.constant 2 : index
    %c1_62 = arith.constant 1 : index
    %89 = vector.load %arg4[%c2_61, %c1_62] : memref<22x44xf32, #tpu.memory_space<vmem>>, vector<16x38xf32>
    %c15 = arith.constant 15 : index
    %c0_63 = arith.constant 0 : index
    %90 = vector.load %arg1[%c15, %c0_63] : memref<49x38xf32, #tpu.memory_space<vmem>>, vector<1x38xf32>
    %91 = vector.broadcast %90 : vector<1x38xf32> to vector<16x38xf32>
    %92 = arith.mulf %89, %91 : vector<16x38xf32>
    %93 = arith.addf %73, %92 : vector<16x38xf32>
    %c2_64 = arith.constant 2 : index
    %c2_65 = arith.constant 2 : index
    %94 = vector.load %arg4[%c2_64, %c2_65] : memref<22x44xf32, #tpu.memory_space<vmem>>, vector<16x38xf32>
    %c16 = arith.constant 16 : index
    %c0_66 = arith.constant 0 : index
    %95 = vector.load %arg1[%c16, %c0_66] : memref<49x38xf32, #tpu.memory_space<vmem>>, vector<1x38xf32>
    %96 = vector.broadcast %95 : vector<1x38xf32> to vector<16x38xf32>
    %97 = arith.mulf %94, %96 : vector<16x38xf32>
    %98 = arith.addf %78, %97 : vector<16x38xf32>
    %c2_67 = arith.constant 2 : index
    %c3_68 = arith.constant 3 : index
    %99 = vector.load %arg4[%c2_67, %c3_68] : memref<22x44xf32, #tpu.memory_space<vmem>>, vector<16x38xf32>
    %c17 = arith.constant 17 : index
    %c0_69 = arith.constant 0 : index
    %100 = vector.load %arg1[%c17, %c0_69] : memref<49x38xf32, #tpu.memory_space<vmem>>, vector<1x38xf32>
    %101 = vector.broadcast %100 : vector<1x38xf32> to vector<16x38xf32>
    %102 = arith.mulf %99, %101 : vector<16x38xf32>
    %103 = arith.addf %83, %102 : vector<16x38xf32>
    %c2_70 = arith.constant 2 : index
    %c4_71 = arith.constant 4 : index
    %104 = vector.load %arg4[%c2_70, %c4_71] : memref<22x44xf32, #tpu.memory_space<vmem>>, vector<16x38xf32>
    %c18 = arith.constant 18 : index
    %c0_72 = arith.constant 0 : index
    %105 = vector.load %arg1[%c18, %c0_72] : memref<49x38xf32, #tpu.memory_space<vmem>>, vector<1x38xf32>
    %106 = vector.broadcast %105 : vector<1x38xf32> to vector<16x38xf32>
    %107 = arith.mulf %104, %106 : vector<16x38xf32>
    %108 = arith.addf %88, %107 : vector<16x38xf32>
    %c2_73 = arith.constant 2 : index
    %c5_74 = arith.constant 5 : index
    %109 = vector.load %arg4[%c2_73, %c5_74] : memref<22x44xf32, #tpu.memory_space<vmem>>, vector<16x38xf32>
    %c19 = arith.constant 19 : index
    %c0_75 = arith.constant 0 : index
    %110 = vector.load %arg1[%c19, %c0_75] : memref<49x38xf32, #tpu.memory_space<vmem>>, vector<1x38xf32>
    %111 = vector.broadcast %110 : vector<1x38xf32> to vector<16x38xf32>
    %112 = arith.mulf %109, %111 : vector<16x38xf32>
    %113 = arith.addf %93, %112 : vector<16x38xf32>
    %c2_76 = arith.constant 2 : index
    %c6_77 = arith.constant 6 : index
    %114 = vector.load %arg4[%c2_76, %c6_77] : memref<22x44xf32, #tpu.memory_space<vmem>>, vector<16x38xf32>
    %c20 = arith.constant 20 : index
    %c0_78 = arith.constant 0 : index
    %115 = vector.load %arg1[%c20, %c0_78] : memref<49x38xf32, #tpu.memory_space<vmem>>, vector<1x38xf32>
    %116 = vector.broadcast %115 : vector<1x38xf32> to vector<16x38xf32>
    %117 = arith.mulf %114, %116 : vector<16x38xf32>
    %118 = arith.addf %98, %117 : vector<16x38xf32>
    %c3_79 = arith.constant 3 : index
    %c0_80 = arith.constant 0 : index
    %119 = vector.load %arg4[%c3_79, %c0_80] : memref<22x44xf32, #tpu.memory_space<vmem>>, vector<16x38xf32>
    %c21 = arith.constant 21 : index
    %c0_81 = arith.constant 0 : index
    %120 = vector.load %arg1[%c21, %c0_81] : memref<49x38xf32, #tpu.memory_space<vmem>>, vector<1x38xf32>
    %121 = vector.broadcast %120 : vector<1x38xf32> to vector<16x38xf32>
    %122 = arith.mulf %119, %121 : vector<16x38xf32>
    %123 = arith.addf %103, %122 : vector<16x38xf32>
    %c3_82 = arith.constant 3 : index
    %c1_83 = arith.constant 1 : index
    %124 = vector.load %arg4[%c3_82, %c1_83] : memref<22x44xf32, #tpu.memory_space<vmem>>, vector<16x38xf32>
    %c22 = arith.constant 22 : index
    %c0_84 = arith.constant 0 : index
    %125 = vector.load %arg1[%c22, %c0_84] : memref<49x38xf32, #tpu.memory_space<vmem>>, vector<1x38xf32>
    %126 = vector.broadcast %125 : vector<1x38xf32> to vector<16x38xf32>
    %127 = arith.mulf %124, %126 : vector<16x38xf32>
    %128 = arith.addf %108, %127 : vector<16x38xf32>
    %c3_85 = arith.constant 3 : index
    %c2_86 = arith.constant 2 : index
    %129 = vector.load %arg4[%c3_85, %c2_86] : memref<22x44xf32, #tpu.memory_space<vmem>>, vector<16x38xf32>
    %c23 = arith.constant 23 : index
    %c0_87 = arith.constant 0 : index
    %130 = vector.load %arg1[%c23, %c0_87] : memref<49x38xf32, #tpu.memory_space<vmem>>, vector<1x38xf32>
    %131 = vector.broadcast %130 : vector<1x38xf32> to vector<16x38xf32>
    %132 = arith.mulf %129, %131 : vector<16x38xf32>
    %133 = arith.addf %113, %132 : vector<16x38xf32>
    %c3_88 = arith.constant 3 : index
    %c3_89 = arith.constant 3 : index
    %134 = vector.load %arg4[%c3_88, %c3_89] : memref<22x44xf32, #tpu.memory_space<vmem>>, vector<16x38xf32>
    %c24 = arith.constant 24 : index
    %c0_90 = arith.constant 0 : index
    %135 = vector.load %arg1[%c24, %c0_90] : memref<49x38xf32, #tpu.memory_space<vmem>>, vector<1x38xf32>
    %136 = vector.broadcast %135 : vector<1x38xf32> to vector<16x38xf32>
    %137 = arith.mulf %134, %136 : vector<16x38xf32>
    %138 = arith.addf %118, %137 : vector<16x38xf32>
    %c3_91 = arith.constant 3 : index
    %c4_92 = arith.constant 4 : index
    %139 = vector.load %arg4[%c3_91, %c4_92] : memref<22x44xf32, #tpu.memory_space<vmem>>, vector<16x38xf32>
    %c25_93 = arith.constant 25 : index
    %c0_94 = arith.constant 0 : index
    %140 = vector.load %arg1[%c25_93, %c0_94] : memref<49x38xf32, #tpu.memory_space<vmem>>, vector<1x38xf32>
    %141 = vector.broadcast %140 : vector<1x38xf32> to vector<16x38xf32>
    %142 = arith.mulf %139, %141 : vector<16x38xf32>
    %143 = arith.addf %123, %142 : vector<16x38xf32>
    %c3_95 = arith.constant 3 : index
    %c5_96 = arith.constant 5 : index
    %144 = vector.load %arg4[%c3_95, %c5_96] : memref<22x44xf32, #tpu.memory_space<vmem>>, vector<16x38xf32>
    %c26 = arith.constant 26 : index
    %c0_97 = arith.constant 0 : index
    %145 = vector.load %arg1[%c26, %c0_97] : memref<49x38xf32, #tpu.memory_space<vmem>>, vector<1x38xf32>
    %146 = vector.broadcast %145 : vector<1x38xf32> to vector<16x38xf32>
    %147 = arith.mulf %144, %146 : vector<16x38xf32>
    %148 = arith.addf %128, %147 : vector<16x38xf32>
    %c3_98 = arith.constant 3 : index
    %c6_99 = arith.constant 6 : index
    %149 = vector.load %arg4[%c3_98, %c6_99] : memref<22x44xf32, #tpu.memory_space<vmem>>, vector<16x38xf32>
    %c27 = arith.constant 27 : index
    %c0_100 = arith.constant 0 : index
    %150 = vector.load %arg1[%c27, %c0_100] : memref<49x38xf32, #tpu.memory_space<vmem>>, vector<1x38xf32>
    %151 = vector.broadcast %150 : vector<1x38xf32> to vector<16x38xf32>
    %152 = arith.mulf %149, %151 : vector<16x38xf32>
    %153 = arith.addf %133, %152 : vector<16x38xf32>
    %c4_101 = arith.constant 4 : index
    %c0_102 = arith.constant 0 : index
    %154 = vector.load %arg4[%c4_101, %c0_102] : memref<22x44xf32, #tpu.memory_space<vmem>>, vector<16x38xf32>
    %c28 = arith.constant 28 : index
    %c0_103 = arith.constant 0 : index
    %155 = vector.load %arg1[%c28, %c0_103] : memref<49x38xf32, #tpu.memory_space<vmem>>, vector<1x38xf32>
    %156 = vector.broadcast %155 : vector<1x38xf32> to vector<16x38xf32>
    %157 = arith.mulf %154, %156 : vector<16x38xf32>
    %158 = arith.addf %138, %157 : vector<16x38xf32>
    %c4_104 = arith.constant 4 : index
    %c1_105 = arith.constant 1 : index
    %159 = vector.load %arg4[%c4_104, %c1_105] : memref<22x44xf32, #tpu.memory_space<vmem>>, vector<16x38xf32>
    %c29 = arith.constant 29 : index
    %c0_106 = arith.constant 0 : index
    %160 = vector.load %arg1[%c29, %c0_106] : memref<49x38xf32, #tpu.memory_space<vmem>>, vector<1x38xf32>
    %161 = vector.broadcast %160 : vector<1x38xf32> to vector<16x38xf32>
    %162 = arith.mulf %159, %161 : vector<16x38xf32>
    %163 = arith.addf %143, %162 : vector<16x38xf32>
    %c4_107 = arith.constant 4 : index
    %c2_108 = arith.constant 2 : index
    %164 = vector.load %arg4[%c4_107, %c2_108] : memref<22x44xf32, #tpu.memory_space<vmem>>, vector<16x38xf32>
    %c30 = arith.constant 30 : index
    %c0_109 = arith.constant 0 : index
    %165 = vector.load %arg1[%c30, %c0_109] : memref<49x38xf32, #tpu.memory_space<vmem>>, vector<1x38xf32>
    %166 = vector.broadcast %165 : vector<1x38xf32> to vector<16x38xf32>
    %167 = arith.mulf %164, %166 : vector<16x38xf32>
    %168 = arith.addf %148, %167 : vector<16x38xf32>
    %c4_110 = arith.constant 4 : index
    %c3_111 = arith.constant 3 : index
    %169 = vector.load %arg4[%c4_110, %c3_111] : memref<22x44xf32, #tpu.memory_space<vmem>>, vector<16x38xf32>
    %c31 = arith.constant 31 : index
    %c0_112 = arith.constant 0 : index
    %170 = vector.load %arg1[%c31, %c0_112] : memref<49x38xf32, #tpu.memory_space<vmem>>, vector<1x38xf32>
    %171 = vector.broadcast %170 : vector<1x38xf32> to vector<16x38xf32>
    %172 = arith.mulf %169, %171 : vector<16x38xf32>
    %173 = arith.addf %153, %172 : vector<16x38xf32>
    %c4_113 = arith.constant 4 : index
    %c4_114 = arith.constant 4 : index
    %174 = vector.load %arg4[%c4_113, %c4_114] : memref<22x44xf32, #tpu.memory_space<vmem>>, vector<16x38xf32>
    %c32 = arith.constant 32 : index
    %c0_115 = arith.constant 0 : index
    %175 = vector.load %arg1[%c32, %c0_115] : memref<49x38xf32, #tpu.memory_space<vmem>>, vector<1x38xf32>
    %176 = vector.broadcast %175 : vector<1x38xf32> to vector<16x38xf32>
    %177 = arith.mulf %174, %176 : vector<16x38xf32>
    %178 = arith.addf %158, %177 : vector<16x38xf32>
    %c4_116 = arith.constant 4 : index
    %c5_117 = arith.constant 5 : index
    %179 = vector.load %arg4[%c4_116, %c5_117] : memref<22x44xf32, #tpu.memory_space<vmem>>, vector<16x38xf32>
    %c33 = arith.constant 33 : index
    %c0_118 = arith.constant 0 : index
    %180 = vector.load %arg1[%c33, %c0_118] : memref<49x38xf32, #tpu.memory_space<vmem>>, vector<1x38xf32>
    %181 = vector.broadcast %180 : vector<1x38xf32> to vector<16x38xf32>
    %182 = arith.mulf %179, %181 : vector<16x38xf32>
    %183 = arith.addf %163, %182 : vector<16x38xf32>
    %c4_119 = arith.constant 4 : index
    %c6_120 = arith.constant 6 : index
    %184 = vector.load %arg4[%c4_119, %c6_120] : memref<22x44xf32, #tpu.memory_space<vmem>>, vector<16x38xf32>
    %c34 = arith.constant 34 : index
    %c0_121 = arith.constant 0 : index
    %185 = vector.load %arg1[%c34, %c0_121] : memref<49x38xf32, #tpu.memory_space<vmem>>, vector<1x38xf32>
    %186 = vector.broadcast %185 : vector<1x38xf32> to vector<16x38xf32>
    %187 = arith.mulf %184, %186 : vector<16x38xf32>
    %188 = arith.addf %168, %187 : vector<16x38xf32>
    %c5_122 = arith.constant 5 : index
    %c0_123 = arith.constant 0 : index
    %189 = vector.load %arg4[%c5_122, %c0_123] : memref<22x44xf32, #tpu.memory_space<vmem>>, vector<16x38xf32>
    %c35 = arith.constant 35 : index
    %c0_124 = arith.constant 0 : index
    %190 = vector.load %arg1[%c35, %c0_124] : memref<49x38xf32, #tpu.memory_space<vmem>>, vector<1x38xf32>
    %191 = vector.broadcast %190 : vector<1x38xf32> to vector<16x38xf32>
    %192 = arith.mulf %189, %191 : vector<16x38xf32>
    %193 = arith.addf %173, %192 : vector<16x38xf32>
    %c5_125 = arith.constant 5 : index
    %c1_126 = arith.constant 1 : index
    %194 = vector.load %arg4[%c5_125, %c1_126] : memref<22x44xf32, #tpu.memory_space<vmem>>, vector<16x38xf32>
    %c36 = arith.constant 36 : index
    %c0_127 = arith.constant 0 : index
    %195 = vector.load %arg1[%c36, %c0_127] : memref<49x38xf32, #tpu.memory_space<vmem>>, vector<1x38xf32>
    %196 = vector.broadcast %195 : vector<1x38xf32> to vector<16x38xf32>
    %197 = arith.mulf %194, %196 : vector<16x38xf32>
    %198 = arith.addf %178, %197 : vector<16x38xf32>
    %c5_128 = arith.constant 5 : index
    %c2_129 = arith.constant 2 : index
    %199 = vector.load %arg4[%c5_128, %c2_129] : memref<22x44xf32, #tpu.memory_space<vmem>>, vector<16x38xf32>
    %c37 = arith.constant 37 : index
    %c0_130 = arith.constant 0 : index
    %200 = vector.load %arg1[%c37, %c0_130] : memref<49x38xf32, #tpu.memory_space<vmem>>, vector<1x38xf32>
    %201 = vector.broadcast %200 : vector<1x38xf32> to vector<16x38xf32>
    %202 = arith.mulf %199, %201 : vector<16x38xf32>
    %203 = arith.addf %183, %202 : vector<16x38xf32>
    %c5_131 = arith.constant 5 : index
    %c3_132 = arith.constant 3 : index
    %204 = vector.load %arg4[%c5_131, %c3_132] : memref<22x44xf32, #tpu.memory_space<vmem>>, vector<16x38xf32>
    %c38 = arith.constant 38 : index
    %c0_133 = arith.constant 0 : index
    %205 = vector.load %arg1[%c38, %c0_133] : memref<49x38xf32, #tpu.memory_space<vmem>>, vector<1x38xf32>
    %206 = vector.broadcast %205 : vector<1x38xf32> to vector<16x38xf32>
    %207 = arith.mulf %204, %206 : vector<16x38xf32>
    %208 = arith.addf %188, %207 : vector<16x38xf32>
    %c5_134 = arith.constant 5 : index
    %c4_135 = arith.constant 4 : index
    %209 = vector.load %arg4[%c5_134, %c4_135] : memref<22x44xf32, #tpu.memory_space<vmem>>, vector<16x38xf32>
    %c39 = arith.constant 39 : index
    %c0_136 = arith.constant 0 : index
    %210 = vector.load %arg1[%c39, %c0_136] : memref<49x38xf32, #tpu.memory_space<vmem>>, vector<1x38xf32>
    %211 = vector.broadcast %210 : vector<1x38xf32> to vector<16x38xf32>
    %212 = arith.mulf %209, %211 : vector<16x38xf32>
    %213 = arith.addf %193, %212 : vector<16x38xf32>
    %c5_137 = arith.constant 5 : index
    %c5_138 = arith.constant 5 : index
    %214 = vector.load %arg4[%c5_137, %c5_138] : memref<22x44xf32, #tpu.memory_space<vmem>>, vector<16x38xf32>
    %c40 = arith.constant 40 : index
    %c0_139 = arith.constant 0 : index
    %215 = vector.load %arg1[%c40, %c0_139] : memref<49x38xf32, #tpu.memory_space<vmem>>, vector<1x38xf32>
    %216 = vector.broadcast %215 : vector<1x38xf32> to vector<16x38xf32>
    %217 = arith.mulf %214, %216 : vector<16x38xf32>
    %218 = arith.addf %198, %217 : vector<16x38xf32>
    %c5_140 = arith.constant 5 : index
    %c6_141 = arith.constant 6 : index
    %219 = vector.load %arg4[%c5_140, %c6_141] : memref<22x44xf32, #tpu.memory_space<vmem>>, vector<16x38xf32>
    %c41 = arith.constant 41 : index
    %c0_142 = arith.constant 0 : index
    %220 = vector.load %arg1[%c41, %c0_142] : memref<49x38xf32, #tpu.memory_space<vmem>>, vector<1x38xf32>
    %221 = vector.broadcast %220 : vector<1x38xf32> to vector<16x38xf32>
    %222 = arith.mulf %219, %221 : vector<16x38xf32>
    %223 = arith.addf %203, %222 : vector<16x38xf32>
    %c6_143 = arith.constant 6 : index
    %c0_144 = arith.constant 0 : index
    %224 = vector.load %arg4[%c6_143, %c0_144] : memref<22x44xf32, #tpu.memory_space<vmem>>, vector<16x38xf32>
    %c42 = arith.constant 42 : index
    %c0_145 = arith.constant 0 : index
    %225 = vector.load %arg1[%c42, %c0_145] : memref<49x38xf32, #tpu.memory_space<vmem>>, vector<1x38xf32>
    %226 = vector.broadcast %225 : vector<1x38xf32> to vector<16x38xf32>
    %227 = arith.mulf %224, %226 : vector<16x38xf32>
    %228 = arith.addf %208, %227 : vector<16x38xf32>
    %c6_146 = arith.constant 6 : index
    %c1_147 = arith.constant 1 : index
    %229 = vector.load %arg4[%c6_146, %c1_147] : memref<22x44xf32, #tpu.memory_space<vmem>>, vector<16x38xf32>
    %c43 = arith.constant 43 : index
    %c0_148 = arith.constant 0 : index
    %230 = vector.load %arg1[%c43, %c0_148] : memref<49x38xf32, #tpu.memory_space<vmem>>, vector<1x38xf32>
    %231 = vector.broadcast %230 : vector<1x38xf32> to vector<16x38xf32>
    %232 = arith.mulf %229, %231 : vector<16x38xf32>
    %233 = arith.addf %213, %232 : vector<16x38xf32>
    %c6_149 = arith.constant 6 : index
    %c2_150 = arith.constant 2 : index
    %234 = vector.load %arg4[%c6_149, %c2_150] : memref<22x44xf32, #tpu.memory_space<vmem>>, vector<16x38xf32>
    %c44 = arith.constant 44 : index
    %c0_151 = arith.constant 0 : index
    %235 = vector.load %arg1[%c44, %c0_151] : memref<49x38xf32, #tpu.memory_space<vmem>>, vector<1x38xf32>
    %236 = vector.broadcast %235 : vector<1x38xf32> to vector<16x38xf32>
    %237 = arith.mulf %234, %236 : vector<16x38xf32>
    %238 = arith.addf %218, %237 : vector<16x38xf32>
    %c6_152 = arith.constant 6 : index
    %c3_153 = arith.constant 3 : index
    %239 = vector.load %arg4[%c6_152, %c3_153] : memref<22x44xf32, #tpu.memory_space<vmem>>, vector<16x38xf32>
    %c45 = arith.constant 45 : index
    %c0_154 = arith.constant 0 : index
    %240 = vector.load %arg1[%c45, %c0_154] : memref<49x38xf32, #tpu.memory_space<vmem>>, vector<1x38xf32>
    %241 = vector.broadcast %240 : vector<1x38xf32> to vector<16x38xf32>
    %242 = arith.mulf %239, %241 : vector<16x38xf32>
    %243 = arith.addf %223, %242 : vector<16x38xf32>
    %c6_155 = arith.constant 6 : index
    %c4_156 = arith.constant 4 : index
    %244 = vector.load %arg4[%c6_155, %c4_156] : memref<22x44xf32, #tpu.memory_space<vmem>>, vector<16x38xf32>
    %c46 = arith.constant 46 : index
    %c0_157 = arith.constant 0 : index
    %245 = vector.load %arg1[%c46, %c0_157] : memref<49x38xf32, #tpu.memory_space<vmem>>, vector<1x38xf32>
    %246 = vector.broadcast %245 : vector<1x38xf32> to vector<16x38xf32>
    %247 = arith.mulf %244, %246 : vector<16x38xf32>
    %248 = arith.addf %228, %247 : vector<16x38xf32>
    %c6_158 = arith.constant 6 : index
    %c5_159 = arith.constant 5 : index
    %249 = vector.load %arg4[%c6_158, %c5_159] : memref<22x44xf32, #tpu.memory_space<vmem>>, vector<16x38xf32>
    %c47 = arith.constant 47 : index
    %c0_160 = arith.constant 0 : index
    %250 = vector.load %arg1[%c47, %c0_160] : memref<49x38xf32, #tpu.memory_space<vmem>>, vector<1x38xf32>
    %251 = vector.broadcast %250 : vector<1x38xf32> to vector<16x38xf32>
    %252 = arith.mulf %249, %251 : vector<16x38xf32>
    %253 = arith.addf %233, %252 : vector<16x38xf32>
    %c6_161 = arith.constant 6 : index
    %c6_162 = arith.constant 6 : index
    %254 = vector.load %arg4[%c6_161, %c6_162] : memref<22x44xf32, #tpu.memory_space<vmem>>, vector<16x38xf32>
    %c48 = arith.constant 48 : index
    %c0_163 = arith.constant 0 : index
    %255 = vector.load %arg1[%c48, %c0_163] : memref<49x38xf32, #tpu.memory_space<vmem>>, vector<1x38xf32>
    %256 = vector.broadcast %255 : vector<1x38xf32> to vector<16x38xf32>
    %257 = arith.mulf %254, %256 : vector<16x38xf32>
    %258 = arith.addf %238, %257 : vector<16x38xf32>
    %259 = arith.addf %258, %243 : vector<16x38xf32>
    %260 = arith.addf %248, %253 : vector<16x38xf32>
    %261 = arith.addf %259, %260 : vector<16x38xf32>
    %262 = vector.extract_strided_slice %261 {offsets = [0, 0], sizes = [16, 16], strides = [1, 1]} : vector<16x38xf32> to vector<16x16xf32>
    %263 = vector.extract_strided_slice %261 {offsets = [0, 22], sizes = [16, 16], strides = [1, 1]} : vector<16x38xf32> to vector<16x16xf32>
    %264 = arith.addf %262, %263 : vector<16x16xf32>
    %cst_164 = arith.constant 0.000000e+00 : f32
    %265 = vector.broadcast %cst_164 : f32 to vector<16x16xf32>
    %266 = arith.subf %265, %264 : vector<16x16xf32>
    %267 = math.exp %266 : vector<16x16xf32>
    %cst_165 = arith.constant 1.000000e+00 : f32
    %268 = vector.broadcast %cst_165 : f32 to vector<16x16xf32>
    %269 = arith.addf %268, %267 : vector<16x16xf32>
    %270 = tpu.reciprocal %269 : vector<16x16xf32> -> vector<16x16xf32>
    %c0_166 = arith.constant 0 : index
    %c0_167 = arith.constant 0 : index
    %c0_168 = arith.constant 0 : index
    %271 = vector.load %arg3[%c0_166, %c0_167, %c0_168] : memref<1x16x16xf32, #tpu.memory_space<vmem>>, vector<1x16x16xf32>
    %272 = vector.shape_cast %271 : vector<1x16x16xf32> to vector<16x16xf32>
    %273 = vector.shape_cast %270 : vector<16x16xf32> to vector<1x16x16xf32>
    tpu.vector_store %arg3[%c0_166, %c0_167, %c0_168], %273 {strides = array<i32>} : memref<1x16x16xf32, #tpu.memory_space<vmem>>, vector<1x16x16xf32>,
    return
  }
  func.func @transform_0(%arg0: i32) -> (i32, i32) {
    %c0_i32 = arith.constant 0 : i32
    %c0_i32_0 = arith.constant 0 : i32
    %c0_i32_1 = arith.constant 0 : i32
    return %c0_i32, %c0_i32_0 : i32, i32
  }
  func.func @transform_1(%arg0: i32) -> (i32, i32, i32, i32) {
    %c0_i32 = arith.constant 0 : i32
    %c0_i32_0 = arith.constant 0 : i32
    %c0_i32_1 = arith.constant 0 : i32
    %c0_i32_2 = arith.constant 0 : i32
    return %arg0, %c0_i32, %c0_i32_0, %c0_i32_1 : i32, i32, i32, i32
  }
  func.func @transform_2(%arg0: i32) -> (i32, i32, i32) {
    %c0_i32 = arith.constant 0 : i32
    %c0_i32_0 = arith.constant 0 : i32
    %c0_i32_1 = arith.constant 0 : i32
    return %arg0, %c0_i32, %c0_i32_0 : i32, i32, i32
  }
}

</mosaic_0001>

<bundles_post_ra>
// kernel: mul.15
= control target key start
LH: loop header
LB: loop body
LE: loop exit
PB: predicated region body
PF: predicated region fallthrough
CT: control target
= control target key end

     0   :  { %s59_s10 = smov 42   ;;  %s60_s11 = smov 28   ;;  %vm3_vm0 = vcmask 56320   ;;  %vm9_vm1 = vcmask 400720   ;;  %vm15_vm2 = vcmask 343320   ;;  %vm21_vm3 = vcmask 285920   ;;  %s99_s0 = inlined_call_operand.vmem [shape: f32[7,7], index: 0, kind: input, shape index: {}]   ;;  %s100_s1 = inlined_call_operand.vmem [shape: f32[49], index: 1, kind: output, shape index: {}]  }
   0x1   :  { %v47_v0 = vld [vmem:[%s99_s0 + $0x6] sm:$0x1]   ;;  %v49_v1 = vld [vmem:[%s99_s0 + $0x4] sm:$0x1]   ;;  %v51_v2 = vld [vmem:[%s99_s0 + $0x2] sm:$0x1]  }
   0x2   :  { %7 = vrot.lane.b32.xlu0 %v47_v0, %s59_s10  ;;  %19 = vrot.lane.b32.xlu1 %v49_v1, %s60_s11  ;;  %s61_s14 = smov 14   ;;  %v48_v3 = vld [vmem:[%s99_s0 + $0x5] sm:$0x1]   ;;  %v50_v4 = vld [vmem:[%s99_s0 + $0x3] sm:$0x1]   ;;  %s62_s21 = smov 35  }
   0x3   :  { %31 = vrot.lane.b32.xlu2 %v51_v2, %s61_s14  ;;  %v52_v5 = vld [vmem:[%s99_s0 + $0x1] sm:$0x1]   ;;  %s63_s22 = smov 21   ;;  %s64_s23 = smov 7   ;;  %v2_v6 = vld [vmem:[%s99_s0] sm:$0x1]  }
   0x4   :  { %4 = vst.msk [vmem:[#allocation0] sm:$0x1] %vm3_vm0, %v2_v6   ;;  %vm27_vm4 = vcmask 228520   ;;  %vm33_vm5 = vcmask 171120   ;;  %vm39_vm6 = vcmask 113720  }
   0xa   :  { %13 = vrot.lane.b32.xlu0 %v48_v3, %s62_s21  ;;  %25 = vrot.lane.b32.xlu1 %v50_v4, %s63_s22 }
   0xb   :  { %37 = vrot.lane.b32.xlu2 %v52_v5, %s64_s23 }
  0x5d   :  { %v32_v7 = vpop.permute.xlu2 %31  }
  0x65   :  { %v38_v8 = vpop.permute.xlu2 %37  }
  0x74   :  { %v8_v9 = vpop.permute.xlu0 %7   ;;  %v20_v10 = vpop.permute.xlu1 %19  }
  0x75   :  { %10 = vst.msk [vmem:[#allocation0] sm:$0x1] %vm9_vm1, %v8_v9  }
  0x7c   :  { %v14_v11 = vpop.permute.xlu0 %13   ;;  %v26_v12 = vpop.permute.xlu1 %25  }
  0x7d   :  { %16 = vst.msk [vmem:[#allocation0] sm:$0x1] %vm15_vm2, %v14_v11  }
  0x7e   :  { %22 = vst.msk [vmem:[#allocation0] sm:$0x1] %vm21_vm3, %v20_v10  }
  0x7f   :  { %28 = vst.msk [vmem:[#allocation0] sm:$0x1] %vm27_vm4, %v26_v12  }
  0x80   :  { %34 = vst.msk [vmem:[#allocation0] sm:$0x1] %vm33_vm5, %v32_v7  }
  0x81   :  { %40 = vst.msk [vmem:[#allocation0] sm:$0x1] %vm39_vm6, %v38_v8  }
  0x88   :  { %v43_v13 = vld [vmem:[#allocation0] sm:$0x1] }
  0x89   :  { %46 = vst [vmem:[%s100_s1] sm:$0x1] %v43_v13 }

// kernel: spatial_attention.1
= control target key start
LH: loop header
LB: loop body
LE: loop exit
PB: predicated region body
PF: predicated region fallthrough
CT: control target
= control target key end

     0   :  { %7 = vsyncpa [#allocation4], 0  ;;  %s2077_s0 = inlined_call_operand.vmem [shape: f32[49,38], index: 0, kind: input, shape index: {}]   ;;  %s2078_s1 = inlined_call_operand.hbm [shape: f32[2,4,16,16], index: 1, kind: input, shape index: {}]   ;;  %s2079_s2 = inlined_call_operand.hbm [shape: f32[2,16,16], index: 2, kind: output, shape index: {}]  }
   0x1   :  { %9 = vsyncpa [#allocation4 + $0x1], 0 }
   0x2   :  { %10 = vsyncpa [#allocation5], 0 }
   0x3   :  { %12 = vsyncpa [#allocation5 + $0x1], 0  ;;  %s1482_s9 = smov 0   ;;  %s1484_s10 = smov 0  }
   0x4   :  { %s1486_s11 = smov 0   ;;  %s1488_s12 = smov 0  }
   0x5 LB: > { %s1503_s13 = sadd.s32 4294967295, %s1445_s12   ;;  %s1208_s14 = sadd.s32 4294967294, %s1445_s12   ;;  %s1445_s12 = sphi %s1488_s12, %s2089_s12   ;;  %s1441_s11 = sphi %s1486_s11, %s2088_s11   ;;  %s1437_s10 = sphi %s1484_s10, %s2087_s10   ;;  %s1433_s9 = sphi %s1482_s9, %s2086_s9  }
   0x6   : > { %s1507_s15 = sadd.s32 1, %s1445_s12   ;;  %s46_s16 = sadd.s32 1, %s1441_s11 }
   0x7   : > { %s43_s17 = ssub.s32 %s1445_s12, %s1507_s15  ;;  %p53_p0 = scmp.ne.s32.totalorder %s1441_s11, %s1437_s10 }
   0x8   : > { %p44_p1 = scmp.eq.s32.totalorder %s43_s17, 0  ;;  %p54_p2 = scmp.eq.s32.totalorder %s1445_s12, 0 }
   0x9   : > { %p59_p3 = scmp.ne.s32.totalorder %s1437_s10, %s1433_s9  ;;  %p60_p4 = scmp.eq.s32.totalorder %s1503_s13, 0 }
   0xa   : > { %s1519_s18 = scalar_select %p44_p1, %s1441_s11, %s46_s16  }
   0xb   : > { %p1521_p5 = por %p54_p2, %p53_p0  ;;  %p1525_p6 = por %p60_p4, %p59_p3 }
   0xc   : > { %p83_p7 = scmp.eq.s32.totalorder %s1503_s13, 1  ;;  %p89_p8 = scmp.eq.s32.totalorder %s1208_s14, 1 }
   0xd   : > { %p1236_p10 = scmp.lt.s32.totalorder %s1445_s12, 2  ;;  %s112_s23 = sand.u32 1, %s1441_s11  }
   0xe   : > { %p1532_p11 = por %p83_p7, %p53_p0  ;;  %p1536_p12 = por %p89_p8, %p59_p3 }
   0xf   : > { %s1222_s24 = sshll.u32 %s1445_s12, 6  ;;  %s1211_s25 = sshll.u32 %s112_s23, 6 }
  0x10   : > { %s121_s28 = scalar_lea.hbm %s2078_s1, %s1222_s24  ;;  %s116_s30 = scalar_lea.vmem [#allocation3], %s1211_s25 }
  0x11   : > { %s122_s29 = sshll.u32 %s121_s28, 4  ;;  %s124_s3 = sshll.u32 %s116_s30, 4  ;;  %s123_s29 = int_to_ptr.hbm [resolvable:$true] %s122_s29  ;;  %s125_s3 = int_to_ptr.vmem [resolvable:$true] %s124_s3 }
  0x12   : > { %p1547_p13 = pnand %p1236_p10, %p1521_p5  ;;  %p1214_p0 = scmp.ge.s32.totalorder %s1445_s12, 1 }
  0x13   : > { %p132_p1 = scmp.lt.s32.totalorder %s1445_s12, 3  ;;  %s113_s5 = scalar_lea.sflag [#allocation4], %s112_s23 }
  0x14   : > { %s1349_s6 = sshra.s32 %s123_s29, 4  ;;  %p1353_p3 = pneg %p1547_p13  ;;  %s1350_s6 = int_to_ptr.hbm [resolvable:$true] %s1349_s6 }
  0x15   : > { %s1351_s7 = scalar_lea.hbm %s1350_s6, 64  ;;  %s1356_s16 = scalar_lea.hbm %s2078_s1, 128 }
  0x16   : > { %p1352_p2 = scmp.ne.s32.totalorder %s1350_s6, %s1351_s7  ;;  %p1357_p5 = scmp.lt.s32.totalorder %s1350_s6, %s2078_s1 }
  0x17   : > { %p1358_p8 = scmp.lt.s32.totalorder %s1356_s16, %s1351_s7 }
  0x18   : > { %p1354_p4 = pnand %p1353_p3, %p1352_p2 }
  0x19   : > { %p1359_p10 = por %p1358_p8, %p1357_p5 }
  0x1a   : > { %p1355_p7 = pneg %p1354_p4 }
  0x1c   : > { %p1360_p9 = pnand %p1359_p10, %p1355_p7 }
  0x1e   : > { %1363 = shalt.err (!%p1360_p9)
}
  0x1f   : > { %s1447_s23 = smov 128   ;;  %s1448_s24 = smov 8  }
  0x20   : > { %1231 = dma.hbm_to_vmem [thread:$0]  (!%p1547_p13), %s123_s29, 1024, %s125_s3, %s113_s5, %s1447_s23, %s1447_s23, %s1448_s24  }
  0x21   : > { %p133_p2 = pnand %p1214_p0, %p132_p1 }
  0x22   : > { %s1568_s25 = sand.u32 (!%p133_p2), 1, %s1437_s10  }
  0x23   : > { %136 = sbr.rel (%p133_p2) target bundleno = 976 (0x3d0), region = 28  ;;  %s1215_s26 = sshll.u32 (!%p133_p2), %s1568_s25, 6 }
  0x24   : > { %s139_s27 = scalar_lea.sflag (!%p133_p2), [#allocation4], %s1568_s25  ;;  %s1572_s28 = scalar_lea.vmem (!%p133_p2), [#allocation3], %s1215_s26 }
  0x28   : > { %1424 = dma.done.wait (%p1525_p6), %s139_s27, 1024  }
  0x29   : > { %1426 = vsyncadd (%p1525_p6), %s139_s27, 4294966272  ;;  %v1449_v0 = vmov 4.0   ;;  %vm172_vm0 = vcmask 130048   ;;  %v1290_v2 = vld [vmem:[%s2077_s0 + $0x1] ss:$0 sm:$0xff]  ;;  %v164_v4 = vld [vmem:[%s1572_s28] sm:$0xff] }
  0x2a   : > { %1339 = vrcp.f32 %v1449_v0  ;;  %v1291_v3 = vld [vmem:[%s2077_s0 + $0x3] ss:$0 sm:$0xff]  ;;  %v166_v5 = vld [vmem:[%s1572_s28 + $0x10] sm:$0xff]  ;;  %s1450_s20 = smov 1   ;;  %v168_v7 = vld [vmem:[%s1572_s28 + $0x20] sm:$0xff]  ;;  %v196_v10 = vsel %vm172_vm0, %v164_v4, -inf }
  0x2b   : > { %248 = vrot.lane.b32.xlu2 %v1290_v2, %s1450_s20  ;;  %v170_v8 = vld [vmem:[%s1572_s28 + $0x30] sm:$0xff]  ;;  %v174_v9 = vsel %vm172_vm0, %v166_v5, 0.0  ;;  %v197_v11 = vsel %vm172_vm0, %v166_v5, -inf  ;;  %v173_v12 = vsel %vm172_vm0, %v164_v4, 0.0  ;;  %s1451_s5 = smov 3   ;;  %v176_v13 = vsel %vm172_vm0, %v168_v7, 0.0 }
  0x2c   : > { %268 = vrot.lane.b32.xlu0 %v1291_v3, %s1451_s5  ;;  %v178_v14 = vsel %vm172_vm0, %v170_v8, 0.0  ;;  %v198_v15 = vsel %vm172_vm0, %v168_v7, -inf  ;;  %v200_v16 = vsel %vm172_vm0, %v170_v8, -inf  ;;  %v175_v19 = vadd.f32 %v174_v9, %v173_v12  ;;  %v165_v21 = vld [vmem:[%s1572_s28 + $0x8] sm:$0xff]  ;;  %v167_v22 = vld [vmem:[%s1572_s28 + $0x18] sm:$0xff]  ;;  %s1452_s8 = smov 25  }
  0x2d   : > { %v199_v17 = vmax.f32 %v196_v10, %v198_v15  ;;  %v201_v18 = vmax.f32 %v197_v11, %v200_v16  ;;  %v169_v23 = vld [vmem:[%s1572_s28 + $0x28] sm:$0xff]  ;;  %v171_v24 = vld [vmem:[%s1572_s28 + $0x38] sm:$0xff]  ;;  %v180_v25 = vsel %vm172_vm0, %v165_v21, 0.0  ;;  %v181_v26 = vsel %vm172_vm0, %v167_v22, 0.0  ;;  %s1453_s14 = smov 2   ;;  %s1454_s29 = smov 4  }
  0x2e   : > { %v203_v27 = vsel %vm172_vm0, %v165_v21, -inf  ;;  %v204_v28 = vsel %vm172_vm0, %v167_v22, -inf  ;;  %v177_v30 = vadd.f32 %v176_v13, %v175_v19  ;;  %v1292_v31 = vld [vmem:[%s2077_s0 + $0x2] ss:$0 sm:$0xff]  ;;  %v205_v33 = vsel %vm172_vm0, %v169_v23, -inf  ;;  %s1455_s7 = smov 5  }
  0x2f   : > { %v202_v29 = vmax.f32 %v199_v17, %v201_v18  ;;  %v207_v34 = vsel %vm172_vm0, %v171_v24, -inf  ;;  %v182_v35 = vadd.f32 %v181_v26, %v180_v25  ;;  %v183_v36 = vsel %vm172_vm0, %v169_v23, 0.0  ;;  %v1293_v47 = vld [vmem:[%s2077_s0 + $0xf] ss:$0 sm:$0xff]  ;;  %v1294_v49 = vld [vmem:[%s2077_s0 + $0x4] ss:$0 sm:$0xff] }
  0x30   : > { %v1340_v1 = vpop.eup %1339  ;;  %v179_v37 = vadd.f32 %v178_v14, %v177_v30  ;;  %v206_v39 = vmax.f32 %v203_v27, %v205_v33  ;;  %v208_v40 = vmax.f32 %v204_v28, %v207_v34  ;;  %v185_v43 = vsel %vm172_vm0, %v171_v24, 0.0  ;;  %v1295_v50 = vld [vmem:[%s2077_s0 + $0x10] ss:$0 sm:$0xff]  ;;  %v1296_v51 = vld [vmem:[%s2077_s0 + $0x8] ss:$0 sm:$0xff]  ;;  %s1456_s26 = smov 6  }
  0x31   : > { %v188_v6 = vmul.f32 4.0, %v1340_v1  ;;  %vm192_vm1 = vweird.f32 %v1340_v1  ;;  %228 = vrot.lane.b32.xlu1 %v202_v29, %s1452_s8  ;;  %v184_v41 = vadd.f32 %v183_v36, %v182_v35  ;;  %v1297_v52 = vld [vmem:[%s2077_s0 + $0x5] ss:$0 sm:$0xff]  ;;  %v1298_v53 = vld [vmem:[%s2077_s0 + $0x11] ss:$0 sm:$0xff]  ;;  %vm210_vm2 = vcmask 359424  }
  0x32   : > { %v209_v45 = vmax.f32 %v206_v39, %v208_v40  ;;  %v1299_v54 = vld [vmem:[%s2077_s0 + $0x9] ss:$0 sm:$0xff]  ;;  %v1300_v55 = vld [vmem:[%s2077_s0 + $0x6] ss:$0 sm:$0xff]  ;;  %v1301_v56 = vld [vmem:[%s2077_s0 + $0x12] ss:$0 sm:$0xff] }
  0x33   : > { %v189_v20 = vsub.f32 1.0, %v188_v6  ;;  %258 = vrot.lane.b32.xlu2 %v1292_v31, %s1453_s14  ;;  %v186_v46 = vadd.f32 %v185_v43, %v184_v41  ;;  %v1302_v57 = vld [vmem:[%s2077_s0 + $0xa] ss:$0 sm:$0xff]  ;;  %v1303_v58 = vld [vmem:[%s2077_s0 + $0x1b] ss:$0 sm:$0xff]  ;;  %v1457_v2 = vmov 0.0  }
  0x34   : > { %v1304_v59 = vld [vmem:[%s2077_s0 + $0x13] ss:$0 sm:$0xff]  ;;  %v1305_v60 = vld [vmem:[%s2077_s0 + $0xb] ss:$0 sm:$0xff]  ;;  %v1306_v61 = vld [vmem:[%s2077_s0 + $0x14] ss:$0 sm:$0xff] }
  0x35   : > { %v190_v32 = vmul.f32 %v1340_v1, %v189_v20  ;;  %v1307_v62 = vld [vmem:[%s2077_s0 + $0xc] ss:$0 sm:$0xff]  ;;  %v1308_v63 = vld [vmem:[%s2077_s0 + $0x27] ss:$0 sm:$0xff]  ;;  %v1309_v0 = vld [vmem:[%s2077_s0 + $0xd] ss:$0 sm:$0xff] }
  0x36   : > { %211 = vst.msk [vmem:[#allocation2] sm:$0xff] %vm210_vm2, %v1457_v2  ;;  %vm213_vm3 = vcmask 357376   ;;  %vm223_vm4 = vcmask 154648   ;;  %vm234_vm5 = vcmask 335048   ;;  %v1311_v8 = vld [vmem:[%s2077_s0 + $0x7] ss:$0 sm:$0xff] }
  0x37   : > { %v191_v38 = vadd.f32 %v1340_v1, %v190_v32  ;;  %212 = vst.msk [vmem:[#allocation2 + $0x8] sm:$0xff] %vm210_vm2, %v1457_v2  ;;  %s1458_s17 = smov 124   ;;  %s1459_s19 = smov 127   ;;  %v1312_v39 = vld [vmem:[%s2077_s0 + $0xe] ss:$0 sm:$0xff] }
  0x38   : > { %214 = vst.msk [vmem:[#allocation2 + $0x10] sm:$0x3f] %vm213_vm3, %v1457_v2  ;;  %s1460_s27 = smov 123   ;;  %s1461_s28 = smov 126  }
  0x39   : > { %v193_v42 = vsel %vm192_vm1, %v1340_v1, %v191_v38  ;;  %230 = vrot.lane.b32.xlu1 %v209_v45, %s1452_s8  ;;  %v1310_v1 = vld [vmem:[%s2077_s0 + $0x17] ss:$0 sm:$0xff]  ;;  %s1462_s4 = smov 122   ;;  %s1463_s8 = smov 125  }
  0x3a   : > { %v194_v44 = vmul.f32 %v193_v42, %v179_v37  ;;  %v195_v48 = vmul.f32 %v193_v42, %v186_v46  ;;  %s1399_s16 = scalar_lea.hbm %s2079_s2, 32 }
  0x3b   : > { %472 = vrot.lane.b32.xlu2 %v1293_v47, %s1450_s20 }
  0x3c   : > { %217 = vrot.lane.b32.xlu0 %v194_v44, %s1451_s5 }
  0x41   : > { %278 = vrot.lane.b32.xlu1 %v1294_v49, %s1454_s29 }
  0x43   : > { %490 = vrot.lane.b32.xlu2 %v1295_v50, %s1453_s14 }
  0x44   : > { %219 = vrot.lane.b32.xlu0 %v195_v48, %s1451_s5 }
  0x49   : > { %296 = vrot.lane.b32.xlu1 %v1297_v52, %s1455_s7 }
  0x4b   : > { %508 = vrot.lane.b32.xlu2 %v1298_v53, %s1451_s5 }
  0x4c   : > { %348 = vrot.lane.b32.xlu0 %v1296_v51, %s1450_s20 }
  0x51   : > { %314 = vrot.lane.b32.xlu1 %v1300_v55, %s1456_s26 }
  0x53   : > { %526 = vrot.lane.b32.xlu2 %v1301_v56, %s1454_s29 }
  0x54   : > { %366 = vrot.lane.b32.xlu0 %v1299_v54, %s1453_s14 }
  0x59   : > { %686 = vrot.lane.b32.xlu1 %v1303_v58, %s1456_s26 }
  0x5b   : > { %544 = vrot.lane.b32.xlu2 %v1304_v59, %s1455_s7 }
  0x5c   : > { %384 = vrot.lane.b32.xlu0 %v1302_v57, %s1451_s5 }
  0x63   : > { %562 = vrot.lane.b32.xlu2 %v1306_v61, %s1456_s26 }
  0x64   : > { %402 = vrot.lane.b32.xlu0 %v1305_v60, %s1454_s29 }
  0x6b   : > { %866 = vrot.lane.b32.xlu2 %v1308_v63, %s1454_s29 }
  0x6c   : > { %420 = vrot.lane.b32.xlu0 %v1307_v62, %s1455_s7 }
  0x74   : > { %438 = vrot.lane.b32.xlu0 %v1309_v0, %s1456_s26 }
  0x7c   : > { %614 = vrot.lane.b32.xlu0 %v1310_v1, %s1453_s14 }
  0x85   : > { %v249_v6 = vpop.permute.xlu2 %248 }
  0x8d   : > { %v259_v13 = vpop.permute.xlu2 %258 }
  0x95   : > { %v473_v37 = vpop.permute.xlu2 %472 }
  0x9d   : > { %v491_v45 = vpop.permute.xlu2 %490 }
  0x9e   : > { %v269_v3 = vpop.permute.xlu0 %268 }
  0xa3   : > { %v229_v4 = vpop.permute.xlu1 %228 }
  0xa5   : > { %v509_v50 = vpop.permute.xlu2 %508 }
  0xab   : > { %v231_v7 = vpop.permute.xlu1 %230 }
  0xad   : > { %v527_v56 = vpop.permute.xlu2 %526 }
  0xae   : > { %v218_v5 = vpop.permute.xlu0 %217 }
  0xaf   : > { %224 = vst.msk [vmem:[#allocation2 + $0x3] sm:$0xff] %vm223_vm4, %v218_v5 }
  0xb0   : > { %235 = vst.msk [vmem:[#allocation2 + $0x3] sm:$0xff] %vm234_vm5, %v229_v4  ;;  %v1313_v4 = vld [vmem:[%s2077_s0 + $0x2b] ss:$0 sm:$0xff] }
  0xb3   : > { %v279_v14 = vpop.permute.xlu1 %278 }
  0xb5   : > { %v545_v62 = vpop.permute.xlu2 %544 }
  0xb6   : > { %v220_v9 = vpop.permute.xlu0 %219 }
  0xb7   : > { %225 = vst.msk [vmem:[#allocation2 + $0xb] sm:$0xff] %vm223_vm4, %v220_v9  ;;  %v1691_v10 = vld [vmem:[#allocation2] sm:$0xff] }
  0xb8   : > { %v329_v11 = vld [vmem:[#allocation2 + $0x1] sm:$0xff]  ;;  %236 = vst.msk [vmem:[#allocation2 + $0xb] sm:$0xff] %vm234_vm5, %v231_v7  ;;  %v1694_v15 = vmul.f32 %v249_v6, %v1691_v10  ;;  %v281_v16 = vmul.f32 %v279_v14, %v1691_v10  ;;  %v1699_v17 = vmul.f32 %v259_v13, %v1691_v10  ;;  %v1702_v18 = vmul.f32 %v269_v3, %v1691_v10 }
  0xb9   : > { %v333_v12 = vmul.f32 %v1311_v8, %v329_v11  ;;  %v453_v40 = vld [vmem:[#allocation2 + $0x2] sm:$0xff] }
  0xba   : > { %285 = vrot.lane.b32.xlu2 %v281_v16, %s1458_s17  ;;  %v457_v43 = vmul.f32 %v1312_v39, %v453_v40  ;;  %v475_v48 = vmul.f32 %v473_v37, %v453_v40  ;;  %v493_v53 = vmul.f32 %v491_v45, %v453_v40  ;;  %v511_v57 = vmul.f32 %v509_v50, %v453_v40 }
  0xbb   : > { %337 = vrot.lane.b32.xlu1 %v333_v12, %s1451_s5  ;;  %v297_v23 = vpop.permute.xlu1 %296  ;;  %v529_v60 = vmul.f32 %v527_v56, %v453_v40  ;;  %v547_v0 = vmul.f32 %v545_v62, %v453_v40  ;;  %v1314_v12 = vld [vmem:[%s2077_s0 + $0x15] ss:$0 sm:$0xff] }
  0xbc   : > { %v299_v24 = vmul.f32 %v297_v23, %v1691_v10 }
  0xbe   : > { %v349_v19 = vpop.permute.xlu0 %348 }
  0xbf   : > { %v1705_v20 = vld [vmem:[#allocation2 + $0x8] sm:$0xff]  ;;  %v351_v21 = vmul.f32 %v349_v19, %v329_v11 }
  0xc0   : > { %v282_v22 = vmul.f32 %v279_v14, %v1705_v20  ;;  %v1712_v25 = vmul.f32 %v269_v3, %v1705_v20  ;;  %v1716_v26 = vmul.f32 %v249_v6, %v1705_v20  ;;  %v1719_v27 = vmul.f32 %v259_v13, %v1705_v20  ;;  %v330_v34 = vld [vmem:[#allocation2 + $0x9] sm:$0xff]  ;;  %v563_v3 = vpop.permute.xlu2 %562  ;;  %v1315_v13 = vld [vmem:[%s2077_s0] ss:$0 sm:$0xff] }
  0xc1   : > { %v300_v30 = vmul.f32 %v297_v23, %v1705_v20  ;;  %v334_v38 = vmul.f32 %v1311_v8, %v330_v34  ;;  %v352_v44 = vmul.f32 %v349_v19, %v330_v34  ;;  %v454_v55 = vld [vmem:[#allocation2 + $0xa] sm:$0xff]  ;;  %v565_v6 = vmul.f32 %v563_v3, %v453_v40 }
  0xc2   : > { %287 = vrot.lane.b32.xlu0 %v282_v22, %s1458_s17  ;;  %303 = vrot.lane.b32.xlu2 %v299_v24, %s1458_s17  ;;  %v458_v58 = vmul.f32 %v1312_v39, %v454_v55  ;;  %v476_v61 = vmul.f32 %v473_v37, %v454_v55  ;;  %v494_v1 = vmul.f32 %v491_v45, %v454_v55  ;;  %v1759_v8 = vld [vmem:[#allocation2 + $0xb] sm:$0xff]  ;;  %v1319_v39 = vld [vmem:[%s2077_s0 + $0x1f] ss:$0 sm:$0xff] }
  0xc3   : > { %355 = vrot.lane.b32.xlu1 %v351_v21, %s1459_s19  ;;  %v315_v31 = vpop.permute.xlu1 %314  ;;  %v512_v5 = vmul.f32 %v509_v50, %v454_v55  ;;  %v566_v9 = vmul.f32 %v563_v3, %v454_v55  ;;  %v582_v14 = vmul.f32 %v1314_v12, %v1759_v8  ;;  %v241_v16 = vmul.f32 %v1315_v13, %v1691_v10  ;;  %v1316_v21 = vld [vmem:[%s2077_s0 + $0x16] ss:$0 sm:$0xff] }
  0xc4   : > { %v317_v32 = vmul.f32 %v315_v31, %v1691_v10  ;;  %v318_v36 = vmul.f32 %v315_v31, %v1705_v20  ;;  %v548_v23 = vmul.f32 %v545_v62, %v454_v55 }
  0xc6   : > { %v367_v28 = vpop.permute.xlu0 %366 }
  0xc7   : > { %v369_v29 = vmul.f32 %v367_v28, %v329_v11  ;;  %v370_v49 = vmul.f32 %v367_v28, %v330_v34 }
  0xc8   : > { %v1757_v7 = vpop.permute.xlu2 %866 }
  0xca   : > { %305 = vrot.lane.b32.xlu0 %v300_v30, %s1458_s17  ;;  %321 = vrot.lane.b32.xlu2 %v317_v32, %s1458_s17  ;;  %v1782_v30 = vld [vmem:[#allocation2 + $0x3] sm:$0xff] }
  0xcb   : > { %373 = vrot.lane.b32.xlu1 %v369_v29, %s1459_s19  ;;  %v1317_v29 = vld [vmem:[%s2077_s0 + $0x2f] ss:$0 sm:$0xff]  ;;  %v1789_v32 = vpop.permute.xlu1 %686 }
  0xce   : > { %v385_v33 = vpop.permute.xlu0 %384 }
  0xcf   : > { %v387_v35 = vmul.f32 %v385_v33, %v329_v11  ;;  %v388_v54 = vmul.f32 %v385_v33, %v330_v34 }
  0xd2   : > { %323 = vrot.lane.b32.xlu0 %v318_v36, %s1458_s17  ;;  %339 = vrot.lane.b32.xlu2 %v334_v38, %s1451_s5  ;;  %v581_v36 = vmul.f32 %v1314_v12, %v1782_v30 }
  0xd3   : > { %391 = vrot.lane.b32.xlu1 %v387_v35, %s1459_s19 }
  0xd6   : > { %v403_v41 = vpop.permute.xlu0 %402 }
  0xd7   : > { %v405_v42 = vmul.f32 %v403_v41, %v329_v11  ;;  %v406_v59 = vmul.f32 %v403_v41, %v330_v34 }
  0xda   : > { %461 = vrot.lane.b32.xlu0 %v457_v43, %s1453_s14  ;;  %357 = vrot.lane.b32.xlu2 %v352_v44, %s1459_s19  ;;  %v1808_v43 = vld [vmem:[%s2077_s0 + $0x23] ss:$0 sm:$0xff]  ;;  %v1810_v44 = vld [vmem:[#allocation2 + $0x5] sm:$0xff] }
  0xdb   : > { %409 = vrot.lane.b32.xlu1 %v405_v42, %s1459_s19 }
  0xde   : > { %v421_v46 = vpop.permute.xlu0 %420 }
  0xdf   : > { %v423_v47 = vmul.f32 %v421_v46, %v329_v11  ;;  %v424_v63 = vmul.f32 %v421_v46, %v330_v34 }
  0xe2   : > { %479 = vrot.lane.b32.xlu0 %v475_v48, %s1453_s14  ;;  %375 = vrot.lane.b32.xlu2 %v370_v49, %s1459_s19 }
  0xe3   : > { %427 = vrot.lane.b32.xlu1 %v423_v47, %s1460_s27 }
  0xe6   : > { %v439_v51 = vpop.permute.xlu0 %438 }
  0xe7   : > { %v441_v52 = vmul.f32 %v439_v51, %v329_v11  ;;  %v442_v2 = vmul.f32 %v439_v51, %v330_v34  ;;  %v530_v11 = vmul.f32 %v527_v56, %v454_v55  ;;  %v1318_v34 = vld [vmem:[%s2077_s0 + $0x1a] ss:$0 sm:$0xff] }
  0xea   : > { %497 = vrot.lane.b32.xlu0 %v493_v53, %s1461_s28  ;;  %393 = vrot.lane.b32.xlu2 %v388_v54, %s1459_s19 }
  0xeb   : > { %445 = vrot.lane.b32.xlu1 %v441_v52, %s1460_s27  ;;  %v1321_v52 = vld [vmem:[%s2077_s0 + $0x26] ss:$0 sm:$0xff] }
  0xee   : > { %v1777_v24 = vpop.permute.xlu0 %614 }
  0xef   : > { %v617_v31 = vmul.f32 %v1777_v24, %v1782_v30 }
  0xf2   : > { %515 = vrot.lane.b32.xlu0 %v511_v57, %s1461_s28  ;;  %411 = vrot.lane.b32.xlu2 %v406_v59, %s1459_s19  ;;  %v1322_v59 = vld [vmem:[%s2077_s0 + $0x29] ss:$0 sm:$0xff] }
  0xf3   : > { %463 = vrot.lane.b32.xlu1 %v458_v58, %s1453_s14 }
  0xfa   : > { %533 = vrot.lane.b32.xlu0 %v529_v60, %s1461_s28  ;;  %429 = vrot.lane.b32.xlu2 %v424_v63, %s1460_s27 }
  0xfb   : > { %481 = vrot.lane.b32.xlu1 %v476_v61, %s1453_s14 }
 0x102   : > { %551 = vrot.lane.b32.xlu0 %v547_v0, %s1461_s28  ;;  %447 = vrot.lane.b32.xlu2 %v442_v2, %s1460_s27 }
 0x103   : > { %499 = vrot.lane.b32.xlu1 %v494_v1, %s1461_s28  ;;  %v1323_v1 = vld [vmem:[%s2077_s0 + $0x2d] ss:$0 sm:$0xff] }
 0x10a   : > { %936 = vrot.lane.b32.xlu0 %v1313_v4, %s1450_s20  ;;  %569 = vrot.lane.b32.xlu2 %v565_v6, %s1462_s4 }
 0x10b   : > { %517 = vrot.lane.b32.xlu1 %v512_v5, %s1461_s28 }
 0x112   : > { %571 = vrot.lane.b32.xlu0 %v566_v9, %s1462_s4  ;;  %587 = vrot.lane.b32.xlu2 %v582_v14, %s1450_s20 }
 0x113   : > { %535 = vrot.lane.b32.xlu1 %v530_v11, %s1461_s28 }
 0x114   : > { %v286_v19 = vpop.permute.xlu2 %285 }
 0x115   : > { %v291_v22 = vadd.f32 %v286_v19, %v241_v16 }
 0x11a   : > { %596 = vrot.lane.b32.xlu0 %v1316_v21, %s1450_s20 }
 0x11b   : > { %553 = vrot.lane.b32.xlu1 %v548_v23, %s1461_s28 }
 0x11c   : > { %v304_v28 = vpop.permute.xlu2 %303 }
 0x11d   : > { %v309_v10 = vadd.f32 %v304_v28, %v1694_v15 }
 0x122   : > { %621 = vrot.lane.b32.xlu0 %v617_v31, %s1450_s20 }
 0x123   : > { %1008 = vrot.lane.b32.xlu1 %v1317_v29, %s1455_s7 }
 0x124   : > { %v322_v33 = vpop.permute.xlu2 %321 }
 0x125   : > { %v327_v35 = vadd.f32 %v322_v33, %v1699_v17  ;;  %v242_v17 = vmul.f32 %v1315_v13, %v1705_v20 }
 0x12a   : > { %668 = vrot.lane.b32.xlu0 %v1318_v34, %s1455_s7 }
 0x12b   : > { %585 = vrot.lane.b32.xlu1 %v581_v36, %s1450_s20 }
 0x12c   : > { %v340_v38 = vpop.permute.xlu2 %339 }
 0x12d   : > { %v338_v15 = vpop.permute.xlu1 %337  ;;  %v344_v40 = vadd.f32 %v340_v38, %v1712_v25  ;;  %v797_v25 = vmul.f32 %v1808_v43, %v1810_v44 }
 0x12e   : > { %v343_v37 = vadd.f32 %v338_v15, %v1702_v18 }
 0x132   : > { %732 = vrot.lane.b32.xlu0 %v1319_v39, %s1451_s5 }
 0x134   : > { %v288_v42 = vpop.permute.xlu0 %287  ;;  %v358_v46 = vpop.permute.xlu2 %357 }
 0x135   : > { %v356_v41 = vpop.permute.xlu1 %355  ;;  %v292_v45 = vadd.f32 %v288_v42, %v242_v17 }
 0x136   : > { %v361_v18 = vadd.f32 %v356_v41, %v291_v22 }
 0x137   : > { %v362_v47 = vadd.f32 %v358_v46, %v292_v45 }
 0x13a   : > { %801 = vrot.lane.b32.xlu0 %v797_v25, %s1451_s5 }
 0x13c   : > { %v306_v20 = vpop.permute.xlu0 %305  ;;  %v376_v51 = vpop.permute.xlu2 %375 }
 0x13d   : > { %v374_v48 = vpop.permute.xlu1 %373  ;;  %v310_v50 = vadd.f32 %v306_v20, %v1716_v26 }
 0x13e   : > { %v379_v49 = vadd.f32 %v374_v48, %v309_v10 }
 0x13f   : > { %v380_v53 = vadd.f32 %v376_v51, %v310_v50  ;;  %v1848_v50 = vld [vmem:[#allocation2 + $0xe] sm:$0xff] }
 0x142   : > { %848 = vrot.lane.b32.xlu0 %v1321_v52, %s1451_s5 }
 0x144   : > { %v324_v55 = vpop.permute.xlu0 %323  ;;  %v394_v58 = vpop.permute.xlu2 %393 }
 0x145   : > { %v392_v54 = vpop.permute.xlu1 %391  ;;  %v328_v57 = vadd.f32 %v324_v55, %v1719_v27  ;;  %v618_v55 = vmul.f32 %v1777_v24, %v1759_v8  ;;  %v1325_v24 = vld [vmem:[%s2077_s0 + $0x22] ss:$0 sm:$0xff] }
 0x146   : > { %v397_v56 = vadd.f32 %v392_v54, %v327_v35 }
 0x147   : > { %v398_v60 = vadd.f32 %v394_v58, %v328_v57  ;;  %v689_v57 = vmul.f32 %v1789_v32, %v1782_v30  ;;  %v1326_v58 = vld [vmem:[%s2077_s0 + $0x21] ss:$0 sm:$0xff] }
 0x14a   : > { %902 = vrot.lane.b32.xlu0 %v1322_v59, %s1456_s26  ;;  %v1872_v59 = vld [vmem:[#allocation2 + $0xd] sm:$0xff] }
 0x14c   : > { %v462_v61 = vpop.permute.xlu0 %461  ;;  %v412_v0 = vpop.permute.xlu2 %411 }
 0x14d   : > { %v410_v26 = vpop.permute.xlu1 %409  ;;  %v467_v63 = vadd.f32 %v462_v61, %v397_v56  ;;  %v416_v2 = vadd.f32 %v412_v0, %v344_v40  ;;  %v690_v56 = vmul.f32 %v1789_v32, %v1759_v8  ;;  %v1327_v32 = vld [vmem:[%s2077_s0 + $0x25] ss:$0 sm:$0xff]  ;;  %v869_v61 = vmul.f32 %v1757_v7, %v1810_v44  ;;  %v1328_v0 = vld [vmem:[%s2077_s0 + $0x2e] ss:$0 sm:$0xff] }
 0x14e   : > { %v415_v62 = vadd.f32 %v410_v26, %v343_v37  ;;  %v870_v26 = vmul.f32 %v1757_v7, %v1872_v59 }
 0x152   : > { %972 = vrot.lane.b32.xlu0 %v1323_v1, %s1451_s5  ;;  %v1329_v1 = vld [vmem:[%s2077_s0 + $0x18] ss:$0 sm:$0xff] }
 0x154   : > { %v480_v3 = vpop.permute.xlu0 %479  ;;  %v430_v6 = vpop.permute.xlu2 %429 }
 0x155   : > { %v428_v27 = vpop.permute.xlu1 %427  ;;  %v485_v5 = vadd.f32 %v480_v3, %v415_v62  ;;  %v434_v9 = vadd.f32 %v430_v6, %v362_v47  ;;  %v1887_v62 = vld [vmem:[#allocation2 + $0x6] sm:$0xff]  ;;  %v1330_v3 = vld [vmem:[%s2077_s0 + $0x1e] ss:$0 sm:$0xff] }
 0x156   : > { %v433_v4 = vadd.f32 %v428_v27, %v361_v18 }
 0x15c   : > { %v498_v12 = vpop.permute.xlu0 %497  ;;  %v448_v16 = vpop.permute.xlu2 %447 }
 0x15d   : > { %v446_v11 = vpop.permute.xlu1 %445  ;;  %v503_v14 = vadd.f32 %v498_v12, %v433_v4  ;;  %v452_v19 = vadd.f32 %v448_v16, %v380_v53 }
 0x15e   : > { %v451_v13 = vadd.f32 %v446_v11, %v379_v49  ;;  %v1324_v49 = vld [vmem:[%s2077_s0 + $0x19] ss:$0 sm:$0xff] }
 0x164   : > { %v516_v22 = vpop.permute.xlu0 %515  ;;  %v570_v29 = vpop.permute.xlu2 %569 }
 0x165   : > { %v464_v21 = vpop.permute.xlu1 %463  ;;  %v1829_v28 = vadd.f32 %v516_v22, %v451_v13  ;;  %v1831_v10 = vadd.f32 %v570_v29, %v503_v14  ;;  %v1331_v13 = vld [vmem:[%s2077_s0 + $0x1d] ss:$0 sm:$0xff]  ;;  %v1333_v22 = vld [vmem:[%s2077_s0 + $0x20] ss:$0 sm:$0xff] }
 0x166   : > { %v468_v23 = vadd.f32 %v464_v21, %v398_v60  ;;  %v798_v60 = vmul.f32 %v1808_v43, %v1872_v59  ;;  %v1332_v21 = vld [vmem:[%s2077_s0 + $0x24] ss:$0 sm:$0xff] }
 0x16c   : > { %v534_v33 = vpop.permute.xlu0 %533  ;;  %v1909_v4 = vpop.permute.xlu2 %587 }
 0x16d   : > { %v482_v31 = vpop.permute.xlu1 %481  ;;  %v1833_v35 = vadd.f32 %v534_v33, %v467_v63 }
 0x16e   : > { %v486_v34 = vadd.f32 %v482_v31, %v416_v2 }
 0x174   : > { %v552_v15 = vpop.permute.xlu0 %551 }
 0x175   : > { %v500_v36 = vpop.permute.xlu1 %499  ;;  %v557_v38 = vadd.f32 %v552_v15, %v485_v5 }
 0x176   : > { %v504_v37 = vadd.f32 %v500_v36, %v434_v9 }
 0x17c   : > { %v937_v40 = vpop.permute.xlu0 %936 }
 0x17d   : > { %v518_v39 = vpop.permute.xlu1 %517  ;;  %v940_v63 = vmul.f32 %v937_v40, %v1848_v50  ;;  %v939_v43 = vmul.f32 %v937_v40, %v1887_v62 }
 0x17e   : > { %v1835_v17 = vadd.f32 %v518_v39, %v452_v19 }
 0x184   : > { %v572_v42 = vpop.permute.xlu0 %571 }
 0x185   : > { %v536_v41 = vpop.permute.xlu1 %535  ;;  %v1837_v45 = vadd.f32 %v572_v42, %v504_v37 }
 0x186   : > { %v540_v18 = vadd.f32 %v536_v41, %v468_v23  ;;  %v1942_v41 = vld [vmem:[#allocation2 + $0xc] sm:$0xff] }
 0x18c   : > { %v597_v47 = vpop.permute.xlu0 %596 }
 0x18d   : > { %v554_v46 = vpop.permute.xlu1 %553  ;;  %v599_v48 = vmul.f32 %v597_v47, %v1782_v30  ;;  %v600_v20 = vmul.f32 %v597_v47, %v1759_v8 }
 0x18e   : > { %v1839_v25 = vadd.f32 %v554_v46, %v486_v34  ;;  %v1936_v34 = vld [vmem:[#allocation2 + $0x4] sm:$0xff] }
 0x18f   : > { %605 = vrot.lane.b32.xlu2 %v600_v20, %s1450_s20  ;;  %603 = vrot.lane.b32.xlu1 %v599_v48, %s1450_s20  ;;  %v1334_v20 = vld [vmem:[%s2077_s0 + $0x28] ss:$0 sm:$0xff] }
 0x194   : > { %v622_v52 = vpop.permute.xlu0 %621 }
 0x195   : > { %v1009_v51 = vpop.permute.xlu1 %1008  ;;  %v1851_v54 = vadd.f32 %v622_v52, %v557_v38 }
 0x196   : > { %v1012_v53 = vmul.f32 %v1009_v51, %v1848_v50  ;;  %v1011_v7 = vmul.f32 %v1009_v51, %v1887_v62 }
 0x197   : > { %650 = vrot.lane.b32.xlu2 %v1324_v49, %s1454_s29  ;;  %623 = vrot.lane.b32.xlu1 %v618_v55, %s1450_s20 }
 0x198   : > { %1017 = vrot.lane.b32.xlu0 %v1012_v53, %s1461_s28  ;;  %v1335_v53 = vld [vmem:[%s2077_s0 + $0x30] ss:$0 sm:$0xff] }
 0x19c   : > { %v669_v2 = vpop.permute.xlu0 %668 }
 0x19d   : > { %v671_v27 = vmul.f32 %v669_v2, %v1782_v30  ;;  %v1920_v14 = vpop.permute.xlu1 %585  ;;  %v672_v16 = vmul.f32 %v669_v2, %v1759_v8 }
 0x19f   : > { %695 = vrot.lane.b32.xlu2 %v690_v56, %s1463_s8  ;;  %693 = vrot.lane.b32.xlu1 %v689_v57, %s1463_s8 }
 0x1a4   : > { %v733_v23 = vpop.permute.xlu0 %732 }
 0x1a7   : > { %778 = vrot.lane.b32.xlu2 %v1325_v24, %s1456_s26  ;;  %760 = vrot.lane.b32.xlu1 %v1326_v58, %s1455_s7 }
 0x1ac   : > { %v802_v37 = vpop.permute.xlu0 %801 }
 0x1af   : > { %830 = vrot.lane.b32.xlu2 %v1327_v32, %s1453_s14  ;;  %803 = vrot.lane.b32.xlu1 %v798_v60, %s1451_s5  ;;  %v1336_v32 = vld [vmem:[%s2077_s0 + $0x2c] ss:$0 sm:$0xff] }
 0x1b7   : > { %875 = vrot.lane.b32.xlu2 %v870_v26, %s1459_s19  ;;  %873 = vrot.lane.b32.xlu1 %v869_v61, %s1459_s19  ;;  %v736_v61 = vmul.f32 %v733_v23, %v1942_v41 }
 0x1bf   : > { %945 = vrot.lane.b32.xlu2 %v940_v63, %s1453_s14  ;;  %943 = vrot.lane.b32.xlu1 %v939_v43, %s1453_s14 }
 0x1c7   : > { %1015 = vrot.lane.b32.xlu2 %v1011_v7, %s1461_s28  ;;  %990 = vrot.lane.b32.xlu1 %v1328_v0, %s1454_s29  ;;  %v1337_v0 = vld [vmem:[%s2077_s0 + $0x2a] ss:$0 sm:$0xff] }
 0x1cf   : > { %632 = vrot.lane.b32.xlu1 %v1329_v1, %s1451_s5 }
 0x1d7   : > { %675 = vrot.lane.b32.xlu1 %v671_v27, %s1463_s8 }
 0x1df   : > { %722 = vrot.lane.b32.xlu1 %v1330_v3, %s1453_s14  ;;  %v921_v3 = vmul.f32 %v1337_v0, %v1887_v62 }
 0x1e9   : > { %v606_v5 = vpop.permute.xlu2 %605 }
 0x1ea   : > { %v1911_v6 = vadd.f32 %v606_v5, %v540_v18 }
 0x1f1   : > { %v651_v9 = vpop.permute.xlu2 %650 }
 0x1f2   : > { %v653_v11 = vmul.f32 %v651_v9, %v1782_v30  ;;  %v654_v12 = vmul.f32 %v651_v9, %v1759_v8 }
 0x1f4   : > { %659 = vrot.lane.b32.xlu0 %v654_v12, %s1463_s8  ;;  %657 = vrot.lane.b32.xlu2 %v653_v11, %s1463_s8  ;;  %v922_v11 = vmul.f32 %v1337_v0, %v1848_v50  ;;  %v735_v12 = vmul.f32 %v733_v23, %v1936_v34 }
 0x1f9   : > { %v696_v19 = vpop.permute.xlu2 %695 }
 0x1fc   : > { %712 = vrot.lane.b32.xlu0 %v1331_v13, %s1450_s20  ;;  %677 = vrot.lane.b32.xlu2 %v672_v16, %s1463_s8 }
 0x201   : > { %v604_v29 = vpop.permute.xlu1 %603  ;;  %v779_v33 = vpop.permute.xlu2 %778 }
 0x202   : > { %v1932_v31 = vadd.f32 %v604_v29, %v1833_v35  ;;  %v781_v36 = vmul.f32 %v779_v33, %v1936_v34  ;;  %v849_v35 = vpop.permute.xlu0 %848  ;;  %v782_v52 = vmul.f32 %v779_v33, %v1942_v41 }
 0x203   : > { %v852_v42 = vmul.f32 %v849_v35, %v1872_v59  ;;  %v851_v56 = vmul.f32 %v849_v35, %v1810_v44 }
 0x204   : > { %812 = vrot.lane.b32.xlu0 %v1332_v21, %s1450_s20  ;;  %742 = vrot.lane.b32.xlu2 %v1333_v22, %s1454_s29 }
 0x209   : > { %v624_v15 = vpop.permute.xlu1 %623  ;;  %v831_v38 = vpop.permute.xlu2 %830 }
 0x20a   : > { %v833_v39 = vmul.f32 %v831_v38, %v1810_v44  ;;  %v903_v48 = vpop.permute.xlu0 %902  ;;  %v834_v57 = vmul.f32 %v831_v38, %v1872_v59  ;;  %v628_v24 = vadd.f32 %v624_v15, %v1839_v25 }
 0x20b   : > { %v906_v49 = vmul.f32 %v903_v48, %v1872_v59  ;;  %v905_v63 = vmul.f32 %v903_v48, %v1810_v44 }
 0x20c   : > { %785 = vrot.lane.b32.xlu0 %v781_v36, %s1458_s17  ;;  %v700_v58 = vadd.f32 %v696_v19, %v628_v24 }
 0x20e   : > { %v738_v43 = vadd.f32 %v736_v61, %v700_v58 }
 0x211   : > { %v694_v40 = vpop.permute.xlu1 %693  ;;  %v876_v60 = vpop.permute.xlu2 %875 }
 0x212   : > { %v973_v7 = vpop.permute.xlu0 %972  ;;  %v699_v5 = vadd.f32 %v694_v40, %v1851_v54 }
 0x213   : > { %v975_v21 = vmul.f32 %v973_v7, %v1887_v62  ;;  %v976_v29 = vmul.f32 %v973_v7, %v1848_v50 }
 0x214   : > { %837 = vrot.lane.b32.xlu0 %v833_v39, %s1459_s19  ;;  %v737_v16 = vadd.f32 %v735_v12, %v699_v5  ;;  %v591_v39 = vadd.f32 %v1920_v14, %v1829_v28 }
 0x216   : > { %v807_v54 = vadd.f32 %v802_v37, %v737_v16 }
 0x219   : > { %v761_v18 = vpop.permute.xlu1 %760  ;;  %v946_v9 = vpop.permute.xlu2 %945 }
 0x21a   : > { %v763_v46 = vmul.f32 %v761_v18, %v1936_v34  ;;  %v764_v47 = vmul.f32 %v761_v18, %v1942_v41  ;;  %v1018_v19 = vpop.permute.xlu0 %1017 }
 0x21c   : > { %857 = vrot.lane.b32.xlu0 %v852_v42, %s1459_s19  ;;  %769 = vrot.lane.b32.xlu2 %v764_v47, %s1458_s17 }
 0x21d   : > { %767 = vrot.lane.b32.xlu1 %v763_v46, %s1458_s17 }
 0x221   : > { %v804_v51 = vpop.permute.xlu1 %803  ;;  %v1016_v33 = vpop.permute.xlu2 %1015 }
 0x222   : > { %v808_v25 = vadd.f32 %v804_v51, %v738_v43 }
 0x224   : > { %911 = vrot.lane.b32.xlu0 %v906_v49, %s1460_s27  ;;  %884 = vrot.lane.b32.xlu2 %v1334_v20, %s1455_s7  ;;  %v880_v2 = vadd.f32 %v876_v60, %v808_v25  ;;  %v592_v25 = vadd.f32 %v1909_v4, %v1835_v17 }
 0x225   : > { %787 = vrot.lane.b32.xlu1 %v782_v52, %s1458_s17 }
 0x226   : > { %v950_v13 = vadd.f32 %v946_v9, %v880_v2 }
 0x228   : > { %v1022_v22 = vadd.f32 %v1018_v19, %v950_v13 }
 0x229   : > { %v874_v55 = vpop.permute.xlu1 %873 }
 0x22a   : > { %v879_v36 = vadd.f32 %v874_v55, %v807_v54 }
 0x22c   : > { %1026 = vrot.lane.b32.xlu0 %v1335_v53, %s1456_s26  ;;  %855 = vrot.lane.b32.xlu2 %v851_v56, %s1459_s19 }
 0x22d   : > { %839 = vrot.lane.b32.xlu1 %v834_v57, %s1459_s19 }
 0x231   : > { %v944_v26 = vpop.permute.xlu1 %943 }
 0x232   : > { %v949_v23 = vadd.f32 %v944_v26, %v879_v36 }
 0x234   : > { %909 = vrot.lane.b32.xlu2 %v905_v63, %s1460_s27  ;;  %v1021_v38 = vadd.f32 %v1016_v33, %v949_v23 }
 0x235   : > { %954 = vrot.lane.b32.xlu1 %v1336_v32, %s1453_s14 }
 0x239   : > { %v991_v1 = vpop.permute.xlu1 %990 }
 0x23a   : > { %v993_v27 = vmul.f32 %v991_v1, %v1887_v62  ;;  %v994_v15 = vmul.f32 %v991_v1, %v1848_v50 }
 0x23c   : > { %997 = vrot.lane.b32.xlu0 %v993_v27, %s1461_s28  ;;  %927 = vrot.lane.b32.xlu2 %v922_v11, %s1453_s14 }
 0x23d   : > { %925 = vrot.lane.b32.xlu1 %v921_v3, %s1453_s14 }
 0x241   : > { %v633_v35 = vpop.permute.xlu1 %632 }
 0x242   : > { %v635_v42 = vmul.f32 %v633_v35, %v1782_v30  ;;  %v636_v18 = vmul.f32 %v633_v35, %v1759_v8 }
 0x244   : > { %1055 = vrot.lane.b32.xlu0 %v1022_v22, %s1459_s19  ;;  %981 = vrot.lane.b32.xlu2 %v976_v29, %s1461_s28 }
 0x245   : > { %979 = vrot.lane.b32.xlu1 %v975_v21, %s1461_s28 }
 0x24c   : > { %1053 = vrot.lane.b32.xlu2 %v1021_v38, %s1459_s19 }
 0x24d   : > { %999 = vrot.lane.b32.xlu1 %v994_v15, %s1461_s28 }
 0x24e   : > { %v658_v37 = vpop.permute.xlu2 %657 }
 0x24f   : > { %v663_v40 = vadd.f32 %v658_v37, %v591_v39 }
 0x254   : > { %641 = vrot.lane.b32.xlu2 %v636_v18, %s1463_s8 }
 0x255   : > { %639 = vrot.lane.b32.xlu1 %v635_v42, %s1463_s8 }
 0x256   : > { %v678_v46 = vpop.permute.xlu2 %677 }
 0x257   : > { %v2000_v47 = vadd.f32 %v678_v46, %v1911_v6  ;;  %v676_v6 = vpop.permute.xlu1 %675 }
 0x258   : > { %v681_v17 = vadd.f32 %v676_v6, %v1932_v31 }
 0x25e   : > { %v743_v28 = vpop.permute.xlu2 %742 }
 0x25f   : > { %v745_v14 = vmul.f32 %v743_v28, %v1936_v34  ;;  %v746_v48 = vmul.f32 %v743_v28, %v1942_v41  ;;  %v723_v58 = vpop.permute.xlu1 %722 }
 0x260   : > { %v725_v11 = vmul.f32 %v723_v58, %v1936_v34  ;;  %v726_v38 = vmul.f32 %v723_v58, %v1942_v41 }
 0x261   : > { %751 = vrot.lane.b32.xlu1 %v746_v48, %s1458_s17  ;;  %749 = vrot.lane.b32.xlu0 %v745_v14, %s1458_s17 }
 0x262   : > { %v727_v22 = vadd.f32 %v725_v11, %v681_v17  ;;  %v728_v37 = vadd.f32 %v726_v38, %v2000_v47 }
 0x266   : > { %v660_v30 = vpop.permute.xlu0 %659 }
 0x26e   : > { %v713_v20 = vpop.permute.xlu0 %712 }
 0x26f   : > { %v716_v0 = vmul.f32 %v713_v20, %v1942_v41  ;;  %v715_v4 = vmul.f32 %v713_v20, %v1936_v34 }
 0x271   : > { %v717_v54 = vadd.f32 %v715_v4, %v663_v40 }
 0x276   : > { %v813_v8 = vpop.permute.xlu0 %812  ;;  %v770_v49 = vpop.permute.xlu2 %769 }
 0x277   : > { %v815_v51 = vmul.f32 %v813_v8, %v1810_v44  ;;  %v816_v52 = vmul.f32 %v813_v8, %v1872_v59 }
 0x279   : > { %821 = vrot.lane.b32.xlu0 %v816_v52, %s1459_s19  ;;  %819 = vrot.lane.b32.xlu2 %v815_v51, %s1459_s19 }
 0x27e   : > { %v786_v53 = vpop.permute.xlu0 %785  ;;  %v885_v55 = vpop.permute.xlu2 %884 }
 0x27f   : > { %v887_v56 = vmul.f32 %v885_v55, %v1810_v44  ;;  %v888_v57 = vmul.f32 %v885_v55, %v1872_v59  ;;  %v664_v44 = vadd.f32 %v660_v30, %v592_v25  ;;  %v791_v29 = vadd.f32 %v786_v53, %v727_v22  ;;  %v1338_v55 = vld [vmem:[%s2077_s0 + $0x1c] ss:$0 sm:$0xff] }
 0x281   : > { %891 = vrot.lane.b32.xlu1 %v887_v56, %s1460_s27  ;;  %893 = vrot.lane.b32.xlu2 %v888_v57, %s1460_s27  ;;  %v718_v7 = vadd.f32 %v716_v0, %v664_v44  ;;  %s1216_s27 = sshll.u32 %s1568_s25, 4 }
 0x283   : > { %v774_v1 = vadd.f32 %v770_v49, %v718_v7 }
 0x286   : > { %v838_v24 = vpop.permute.xlu0 %837  ;;  %v856_v32 = vpop.permute.xlu2 %855 }
 0x287   : > { %v861_v33 = vadd.f32 %v856_v32, %v791_v29 }
 0x28e   : > { %v858_v60 = vpop.permute.xlu0 %857  ;;  %v910_v61 = vpop.permute.xlu2 %909 }
 0x28f   : > { %v768_v26 = vpop.permute.xlu1 %767 }
 0x290   : > { %v773_v36 = vadd.f32 %v768_v26, %v717_v54 }
 0x296   : > { %v912_v63 = vpop.permute.xlu0 %911  ;;  %v928_v59 = vpop.permute.xlu2 %927 }
 0x297   : > { %v788_v43 = vpop.permute.xlu1 %787 }
 0x298   : > { %v792_v18 = vadd.f32 %v788_v43, %v728_v37  ;;  %v706_v43 = vmul.f32 %v1338_v55, %v1942_v41 }
 0x29a   : > { %v862_v48 = vadd.f32 %v858_v60, %v792_v18 }
 0x29e   : > { %v1027_v2 = vpop.permute.xlu0 %1026  ;;  %v982_v12 = vpop.permute.xlu2 %981 }
 0x29f   : > { %v840_v27 = vpop.permute.xlu1 %839  ;;  %v1029_v3 = vmul.f32 %v1027_v2, %v1887_v62  ;;  %v1030_v31 = vmul.f32 %v1027_v2, %v1848_v50 }
 0x2a0   : > { %v844_v5 = vadd.f32 %v840_v27, %v774_v1 }
 0x2a1   : > { %1033 = vrot.lane.b32.xlu2 %v1029_v3, %s1462_s4 }
 0x2a2   : > { %v916_v9 = vadd.f32 %v912_v63, %v844_v5 }
 0x2a4   : > { %v986_v13 = vadd.f32 %v982_v12, %v916_v9 }
 0x2a6   : > { %v1054_v46 = vpop.permute.xlu2 %1053 }
 0x2a7   : > { %v955_v16 = vpop.permute.xlu1 %954 }
 0x2a8   : > { %v957_v19 = vmul.f32 %v955_v16, %v1887_v62  ;;  %v958_v21 = vmul.f32 %v955_v16, %v1848_v50  ;;  %v843_v62 = vadd.f32 %v838_v24, %v773_v36  ;;  %v932_v50 = vadd.f32 %v928_v59, %v862_v48 }
 0x2a9   : > { %1045 = vrot.lane.b32.xlu2 %v986_v13, %s1459_s19  ;;  %v705_v24 = vmul.f32 %v1338_v55, %v1936_v34 }
 0x2aa   : > { %963 = vrot.lane.b32.xlu1 %v958_v21, %s1461_s28  ;;  %961 = vrot.lane.b32.xlu0 %v957_v19, %s1461_s28  ;;  %v915_v42 = vadd.f32 %v910_v61, %v843_v62 }
 0x2ae   : > { %v998_v39 = vpop.permute.xlu0 %997  ;;  %v642_v52 = vpop.permute.xlu2 %641 }
 0x2af   : > { %v926_v23 = vpop.permute.xlu1 %925  ;;  %v646_v61 = vadd.f32 %v642_v52, %v1837_v45 }
 0x2b0   : > { %v931_v15 = vadd.f32 %v926_v23, %v861_v33 }
 0x2b1   : > { %v708_v7 = vadd.f32 %v706_v43, %v646_v61 }
 0x2b2   : > { %1035 = vrot.lane.b32.xlu0 %v1030_v31, %s1462_s4  ;;  %v1003_v35 = vadd.f32 %v998_v39, %v931_v15  ;;  %s1223_s4 = sshll.u32 %s1503_s13, 4  ;;  %s1120_s13 = scalar_lea.sflag [#allocation5], %s1568_s25 }
 0x2b3   : > { %s1131_s30 = scalar_lea.hbm %s2079_s2, %s1223_s4 }
 0x2b4   : > { %v1059_v40 = vadd.f32 %v1054_v46, %v1003_v35  ;;  %s1134_s20 = sshll.u32 %s1131_s30, 4  ;;  %s1135_s20 = int_to_ptr.hbm [resolvable:$true] %s1134_s20 }
 0x2b5   : > { %s1393_s29 = sshra.s32 %s1135_s20, 4  ;;  %s1394_s29 = int_to_ptr.hbm [resolvable:$true] %s1393_s29 }
 0x2b6   : > { %v1056_v8 = vpop.permute.xlu0 %1055  ;;  %s1395_s6 = scalar_lea.hbm %s1394_s29, 16  ;;  %p1400_p0 = scmp.lt.s32.totalorder %s1394_s29, %s2079_s2 }
 0x2b7   : > { %v980_v28 = vpop.permute.xlu1 %979  ;;  %p1396_p6 = scmp.ne.s32.totalorder %s1394_s29, %s1395_s6  ;;  %p1401_p1 = scmp.lt.s32.totalorder %s1399_s16, %s1395_s6 }
 0x2b8   : > { %v985_v14 = vadd.f32 %v980_v28, %v915_v42 }
 0x2b9   : > { %p1397_p9 = pnand %p1396_p6, %p1532_p11  ;;  %p1402_p3 = por %p1401_p1, %p1400_p0 }
 0x2ba   : > { %1043 = vrot.lane.b32.xlu1 %v985_v14, %s1459_s19  ;;  %1063 = vrot.lane.b32.xlu0 %v1059_v40, %s1461_s28  ;;  %s1464_s19 = smov 106  }
 0x2bb   : > { %p1398_p13 = pneg %p1397_p9 }
 0x2bd   : > { %p1403_p4 = pnand %p1402_p3, %p1398_p13 }
 0x2bf   : > { %v1000_v30 = vpop.permute.xlu1 %999 }
 0x2c0   : > { %v1004_v20 = vadd.f32 %v1000_v30, %v932_v50 }
 0x2c2   : > { %v1060_v49 = vadd.f32 %v1056_v8, %v1004_v20 }
 0x2c4   : > { %1065 = vrot.lane.b32.xlu1 %v1060_v49, %s1461_s28  ;;  %s163_s28 = scalar_lea.vmem [#allocation6], %s1216_s27 }
 0x2c5   : > { %s1132_s3 = sshll.u32 %s163_s28, 4  ;;  %s1133_s3 = int_to_ptr.vmem [resolvable:$true] %s1132_s3 }
 0x2c7   : > { %v640_v47 = vpop.permute.xlu1 %639 }
 0x2c8   : > { %v645_v57 = vadd.f32 %v640_v47, %v1831_v10 }
 0x2ca   : > { %v707_v60 = vadd.f32 %v705_v24, %v645_v57 }
 0x2d3   : > { %v750_v51 = vpop.permute.xlu0 %749  ;;  %v752_v6 = vpop.permute.xlu1 %751 }
 0x2d4   : > { %v820_v56 = vpop.permute.xlu2 %819  ;;  %v755_v26 = vadd.f32 %v750_v51, %v707_v60  ;;  %v756_v1 = vadd.f32 %v752_v6, %v708_v7 }
 0x2d6   : > { %v825_v25 = vadd.f32 %v820_v56, %v755_v26 }
 0x2dc   : > { %v894_v63 = vpop.permute.xlu2 %893 }
 0x2eb   : > { %v822_v53 = vpop.permute.xlu0 %821 }
 0x2ec   : > { %v826_v27 = vadd.f32 %v822_v53, %v756_v1 }
 0x2ee   : > { %v898_v5 = vadd.f32 %v894_v63, %v826_v27 }
 0x2f3   : > { %v892_v58 = vpop.permute.xlu1 %891 }
 0x2f4   : > { %v897_v59 = vadd.f32 %v892_v58, %v825_v25 }
 0x2fb   : > { %v1034_v10 = vpop.permute.xlu2 %1033 }
 0x303   : > { %v1046_v41 = vpop.permute.xlu2 %1045 }
 0x31c   : > { %v962_v32 = vpop.permute.xlu0 %961  ;;  %v964_v0 = vpop.permute.xlu1 %963 }
 0x31d   : > { %v967_v2 = vadd.f32 %v962_v32, %v897_v59  ;;  %v968_v12 = vadd.f32 %v964_v0, %v898_v5 }
 0x31f   : > { %v1039_v3 = vadd.f32 %v1034_v10, %v967_v2 }
 0x324   : > { %v1036_v44 = vpop.permute.xlu0 %1035 }
 0x325   : > { %v1040_v45 = vadd.f32 %v1036_v44, %v968_v12 }
 0x327   : > { %v1050_v16 = vadd.f32 %v1046_v41, %v1040_v45 }
 0x32c   : > { %v1044_v34 = vpop.permute.xlu1 %1043  ;;  %v1064_v11 = vpop.permute.xlu0 %1063 }
 0x32d   : > { %v1049_v9 = vadd.f32 %v1044_v34, %v1039_v3 }
 0x32f   : > { %v1069_v13 = vadd.f32 %v1064_v11, %v1049_v9 }
 0x331   : > { %1073 = vrot.lane.b32.xlu2 %v1069_v13, %s1464_s19 }
 0x336   : > { %v1066_v17 = vpop.permute.xlu1 %1065 }
 0x337   : > { %v1070_v4 = vadd.f32 %v1066_v17, %v1050_v16 }
 0x339   : > { %1075 = vrot.lane.b32.xlu0 %v1070_v4, %s1464_s19 }
 0x38b   : > { %v1074_v19 = vpop.permute.xlu2 %1073 }
 0x38c   : > { %v1079_v21 = vadd.f32 %v1074_v19, %v1069_v13 }
 0x38e   : > { %v1081_v22 = vsub.f32 0.0, %v1079_v21 }
 0x390   : > { %v1083_v29 = vmul.f32 1.442695, %v1081_v22 }
 0x392   : > { %1341 = vpow2.f32 %v1083_v29 }
 0x398   : > { %v1342_v54 = vpop.eup %1341 }
 0x399   : > { %v1087_v33 = vadd.f32 1.0, %v1342_v54 }
 0x39b   : > { %1343 = vrcp.f32 %v1087_v33  ;;  %v1100_v15 = vand.u32 2147483648, %v1087_v33  ;;  %v1098_v62 = vand.u32 2147483647, %v1087_v33  ;;  %vm1094_vm7 = vweird.f32 %v1087_v33 }
 0x39d   : > { %v1101_v37 = vor.u32 1.1754944e-38, %v1100_v15  ;;  %vm1099_vm9 = vcmp.eq.f32.partialorder %v1098_v62, 8.507059e+37 }
 0x3a1   : > { %v1344_v36 = vpop.eup %1343 }
 0x3a2   : > { %v1090_v23 = vmul.f32 %v1344_v36, %v1087_v33  ;;  %vm1095_vm6 = vweird.f32 %v1344_v36 }
 0x3a3   : > { %vm1096_vm8 = vmor %vm1094_vm7, %vm1095_vm6 }
 0x3a4   : > { %v1091_v31 = vsub.f32 1.0, %v1090_v23 }
 0x3a6   : > { %v1092_v38 = vmul.f32 %v1344_v36, %v1091_v31 }
 0x3a8   : > { %v1093_v39 = vadd.f32 %v1344_v36, %v1092_v38 }
 0x3aa   : > { %v1097_v35 = vsel %vm1096_vm8, %v1344_v36, %v1093_v39 }
 0x3ab   : > { %v1102_v42 = vsel %vm1099_vm9, %v1101_v37, %v1097_v35  ;;  %v1076_v18 = vpop.permute.xlu0 %1075 }
 0x3ac   : > { %v1080_v46 = vadd.f32 %v1076_v18, %v1070_v4  ;;  %1117 = vst.msk [vmem:[%s163_s28] sm:$0xff] %vm172_vm0, %v1102_v42 }
 0x3ae   : > { %v1082_v28 = vsub.f32 0.0, %v1080_v46 }
 0x3b0   : > { %v1085_v40 = vmul.f32 1.442695, %v1082_v28 }
 0x3b2   : > { %1345 = vpow2.f32 %v1085_v40 }
 0x3b8   : > { %v1346_v14 = vpop.eup %1345 }
 0x3b9   : > { %v1088_v48 = vadd.f32 1.0, %v1346_v14 }
 0x3bb   : > { %1347 = vrcp.f32 %v1088_v48  ;;  %v1114_v8 = vand.u32 2147483648, %v1088_v48  ;;  %v1112_v47 = vand.u32 2147483647, %v1088_v48  ;;  %vm1108_vm11 = vweird.f32 %v1088_v48 }
 0x3bd   : > { %v1115_v52 = vor.u32 1.1754944e-38, %v1114_v8  ;;  %vm1113_vm13 = vcmp.eq.f32.partialorder %v1112_v47, 8.507059e+37 }
 0x3c1   : > { %v1348_v50 = vpop.eup %1347 }
 0x3c2   : > { %v1104_v30 = vmul.f32 %v1348_v50, %v1088_v48  ;;  %vm1109_vm10 = vweird.f32 %v1348_v50 }
 0x3c3   : > { %vm1110_vm12 = vmor %vm1108_vm11, %vm1109_vm10 }
 0x3c4   : > { %v1105_v20 = vsub.f32 1.0, %v1104_v30 }
 0x3c6   : > { %v1106_v49 = vmul.f32 %v1348_v50, %v1105_v20 }
 0x3c8   : > { %v1107_v51 = vadd.f32 %v1348_v50, %v1106_v49 }
 0x3ca   : > { %v1111_v6 = vsel %vm1110_vm12, %v1348_v50, %v1107_v51 }
 0x3cb   : > { %v1116_v53 = vsel %vm1113_vm13, %v1115_v52, %v1111_v6 }
 0x3cc   : > { %1118 = vst.msk [vmem:[%s163_s28 + $0x8] sm:$0xff] %vm172_vm0, %v1116_v53 }
 0x3cd   : > { %1406 = shalt.err (!%p1403_p4)
}
 0x3ce   : > { %s1465_s25 = smov 128   ;;  %s1466_s14 = smov 8  }
 0x3cf   : > { %1226 = dma.vmem_to_hbm [thread:$0]  (%p1532_p11), %s1133_s3, 256, %s1135_s20, %s1120_s13, %s1465_s25, %s1465_s25, %s1466_s14  }
 0x3d0 PF: > { %s1149_s17 = sand.u32 1, %s1433_s9   ;;  %p2085_p7 = scmp.ge.s32.totalorder %s1445_s12, 2 }
 0x3d1   : > { %s1150_s19 = scalar_lea.sflag [#allocation5], %s1149_s17 }
 0x3d2   : > { %p1233_p5 = pnand %p2085_p7, %p1536_p12 }
 0x3d4   : > { %p1234_p8 = pneg %p1233_p5 }
 0x3d6   : > { %1428 = dma.done.wait (%p1234_p8), %s1150_s19, 256  }
 0x3d7   : > { %1430 = vsyncadd (%p1234_p8), %s1150_s19, 4294967040  ;;  %p15_p10 = scmp.ge.s32.totalorder %s1507_s15, 4   ;;  %s2086_s9 = smov %s1437_s10 }
 0x3d8   : > { %s2087_s10 = smov %s1441_s11  ;;  %s2088_s11 = smov %s1519_s18 }
 0x3d9   : > { %s2089_s12 = smov %s1507_s15  ;;  %17 = sbr.rel (!%p15_p10) target bundleno = 5 (0x5), region = 73 }
 0x3de   :  { %1156 = vsyncpa [#allocation4], 1 }
 0x3df   :  { %1158 = vsyncpa [#allocation4 + $0x1], 1 }
 0x3e0   :  { %1159 = vsyncpa [#allocation5], 1 }
 0x3e1   :  { %1161 = vsyncpa [#allocation5 + $0x1], 1 }

</bundles_post_ra>
